<compile_context>
chip_gen: v7x
topology: tpu7x:2x2x1
jax: 0.10.0
libtpu: 0.0.40
codegen_flags: <defaults>
</compile_context>

<pallas_src>
import jax
import jax.numpy as jnp
from jax import lax
from jax.experimental import pallas as pl
from jax.experimental.pallas import tpu as pltpu

# Small, forward-consistent hyperparameters
VOCAB = 128
EMB = 32        # embedding_dim
HIDDEN = 32     # hidden_size
N_LAYERS = 2
OUT = 1         # output_size
BATCH = 2
SEQ = 8


# ----------------------------- Pallas kernel ------------------------------ #

def _gru_cell_fused(gi, h, w_hh, b_h, H):
    """One GRU step with lane-fused gates.

    gi:   [B, 3H] precomputed input projection (+ folded r/z/n input biases).
    h:    [B, H]  previous hidden state.
    w_hh: [H, 3H] fused hidden weights (r|z|n).
    b_h:  [1, 3H] fused hidden bias (0|0|b_hh_n).
    """
    gh = jnp.dot(h, w_hh, preferred_element_type=jnp.float32) + b_h
    rz = jax.nn.sigmoid(gi[:, :2 * H] + gh[:, :2 * H])   # one sigmoid for r|z
    r = rz[:, :H]
    z = rz[:, H:]
    n = jnp.tanh(gi[:, 2 * H:] + r * gh[:, 2 * H:])
    return (1.0 - z) * n + z * h


def sentiment_kernel(tok_ref,                     # SMEM int32 [T*B], time-major
                     emb_ref,                     # VMEM [VOCAB, E]
                     w_ih1_ref, w_hh1_ref, b_i1_ref, b_h1_ref,
                     w_ih2_ref, w_hh2_ref, b_i2_ref, b_h2_ref,
                     w_fc_ref, b_fc_ref,          # [1, H], [1, OUT]
                     out_ref,                     # [B, OUT]
                     x_scratch):                  # VMEM [T*B, E]
    TB = x_scratch.shape[0]
    H = w_hh1_ref.shape[0]
    B = out_ref.shape[0]
    T = TB // B

    # --- Embedding lookup folded into the kernel: gather rows by SMEM ids. ---
    for i in range(TB):
        tok = tok_ref[i]
        x_scratch[pl.ds(i, 1), :] = emb_ref[pl.ds(tok, 1), :]

    # --- Layer-1 input projection for ALL timesteps in one fused matmul. ---
    gi1_all = (jnp.dot(x_scratch[...], w_ih1_ref[...],
                       preferred_element_type=jnp.float32)
               + b_i1_ref[...])                   # [T*B, 3H]

    # Recurrent weights loaded once (3 x [H, 3H] f32 -> small vreg footprint).
    w_hh1 = w_hh1_ref[...]; b_h1 = b_h1_ref[...]
    w_ih2 = w_ih2_ref[...]; b_i2 = b_i2_ref[...]
    w_hh2 = w_hh2_ref[...]; b_h2 = b_h2_ref[...]

    h1 = jnp.zeros((B, H), jnp.float32)
    h2 = jnp.zeros((B, H), jnp.float32)

    # --- Recurrence, fully unrolled (T static and tiny): only h-dependent
    #     matmuls remain on the serial critical path. ---
    # TODO(synk): nn.GRU inter-layer dropout (p=0.5) is train-mode only; this is
    # the deterministic eval-mode forward (dropout == identity).
    for t in range(T):
        gi1 = gi1_all[t * B:(t + 1) * B, :]
        h1 = _gru_cell_fused(gi1, h1, w_hh1, b_h1, H)
        gi2 = jnp.dot(h1, w_ih2, preferred_element_type=jnp.float32) + b_i2
        h2 = _gru_cell_fused(gi2, h2, w_hh2, b_h2, H)

    # --- fc(h_n[-1]): OUT == 1, so replace the 1-lane MXU matmul with a
    #     VPU multiply + lane reduction. ---
    out_ref[...] = (jnp.sum(h2 * w_fc_ref[...], axis=-1, keepdims=True)
                    + b_fc_ref[...])


# ------------------------------ host wrapper ------------------------------ #

def _fuse_gates(w):
    """[3, IN, H] per-gate (r, z, n) -> [IN, 3H] lane-fused."""
    return jnp.concatenate([w[0], w[1], w[2]], axis=-1)


def _fuse_biases(b_ih, b_hh):
    """[3,1,H] x 2 -> (b_i [1,3H], b_h [1,3H]); r/z biases pre-summed, b_hh_n
    kept on the hidden path (it must stay inside the r * (.) term)."""
    zero = jnp.zeros_like(b_hh[2])
    b_i = jnp.concatenate([b_ih[0] + b_hh[0], b_ih[1] + b_hh[1], b_ih[2]],
                          axis=-1)
    b_h = jnp.concatenate([zero, zero, b_hh[2]], axis=-1)
    return b_i, b_h


def sentiment_forward(tokens, params):
    """tokens: int32 [B, T] token ids.  Returns [B, OUT] float32 logits."""
    B, T = tokens.shape

    # Host-side weight packing (done once; lane-dense [IN, 3H] layout).
    w_ih1f = _fuse_gates(params["w_ih1"])
    w_hh1f = _fuse_gates(params["w_hh1"])
    b_i1, b_h1 = _fuse_biases(params["b_ih1"], params["b_hh1"])
    w_ih2f = _fuse_gates(params["w_ih2"])
    w_hh2f = _fuse_gates(params["w_hh2"])
    b_i2, b_h2 = _fuse_biases(params["b_ih2"], params["b_hh2"])
    w_fc_row = jnp.transpose(params["w_fc"])      # [OUT, H] == [1, H] (OUT=1)
    b_fc = params["b_fc"]                         # [1, OUT]

    # Token ids, time-major flat: index t*B + b  <->  tokens[b, t].
    tok_flat = jnp.transpose(tokens, (1, 0)).reshape(-1).astype(jnp.int32)

    args = (tok_flat, params["embedding"].astype(jnp.float32),
            w_ih1f, w_hh1f, b_i1, b_h1,
            w_ih2f, w_hh2f, b_i2, b_h2,
            w_fc_row, b_fc)

    in_specs = ([pl.BlockSpec(memory_space=pltpu.MemorySpace.SMEM)]
                + [pl.BlockSpec(memory_space=pltpu.MemorySpace.VMEM)
                   for _ in args[1:]])

    # NOTE(v7x): a gridless call runs on one TensorCore; if B grows, add a
    # leading "parallel" batch grid axis to shard across both TCs.
    return pl.pallas_call(
        sentiment_kernel,
        out_shape=jax.ShapeDtypeStruct((B, OUT), jnp.float32),
        in_specs=in_specs,
        out_specs=pl.BlockSpec(memory_space=pltpu.MemorySpace.VMEM),
        scratch_shapes=[pltpu.VMEM((T * B, EMB), jnp.float32)],
    )(*args)


# --------------------------- params & reference --------------------------- #

def init_params(key):
    ks = jax.random.split(key, 12)
    s = 0.1
    return {
        "embedding": s * jax.random.normal(ks[0], (VOCAB, EMB), jnp.float32),
        # layer 1 (input = EMB); gate order r, z, n as in torch.nn.GRU
        "w_ih1": s * jax.random.normal(ks[1], (3, EMB, HIDDEN), jnp.float32),
        "w_hh1": s * jax.random.normal(ks[2], (3, HIDDEN, HIDDEN), jnp.float32),
        "b_ih1": s * jax.random.normal(ks[3], (3, 1, HIDDEN), jnp.float32),
        "b_hh1": s * jax.random.normal(ks[4], (3, 1, HIDDEN), jnp.float32),
        # layer 2 (input = HIDDEN)
        "w_ih2": s * jax.random.normal(ks[5], (3, HIDDEN, HIDDEN), jnp.float32),
        "w_hh2": s * jax.random.normal(ks[6], (3, HIDDEN, HIDDEN), jnp.float32),
        "b_ih2": s * jax.random.normal(ks[7], (3, 1, HIDDEN), jnp.float32),
        "b_hh2": s * jax.random.normal(ks[8], (3, 1, HIDDEN), jnp.float32),
        # fc
        "w_fc": s * jax.random.normal(ks[9], (HIDDEN, OUT), jnp.float32),
        "b_fc": s * jax.random.normal(ks[10], (1, OUT), jnp.float32),
    }


def _gru_cell_ref(x, h, w_ih, w_hh, b_ih, b_hh):
    """Per-gate reference GRU cell (torch.nn.GRU semantics)."""
    r = jax.nn.sigmoid(jnp.dot(x, w_ih[0]) + b_ih[0] + jnp.dot(h, w_hh[0]) + b_hh[0])
    z = jax.nn.sigmoid(jnp.dot(x, w_ih[1]) + b_ih[1] + jnp.dot(h, w_hh[1]) + b_hh[1])
    n = jnp.tanh(jnp.dot(x, w_ih[2]) + b_ih[2] + r * (jnp.dot(h, w_hh[2]) + b_hh[2]))
    return (1.0 - z) * n + z * h


def reference_forward(tokens, params):
    """Pure-JAX reference replicating the same eval-mode forward."""
    emb = params["embedding"][tokens].astype(jnp.float32)  # [B, T, E]
    B = tokens.shape[0]
    h1 = jnp.zeros((B, HIDDEN), jnp.float32)
    h2 = jnp.zeros((B, HIDDEN), jnp.float32)
    for t in range(tokens.shape[1]):
        x_t = emb[:, t, :]
        h1 = _gru_cell_ref(x_t, h1, params["w_ih1"], params["w_hh1"],
                           params["b_ih1"], params["b_hh1"])
        h2 = _gru_cell_ref(h1, h2, params["w_ih2"], params["w_hh2"],
                           params["b_ih2"], params["b_hh2"])
    return jnp.dot(h2, params["w_fc"]) + params["b_fc"]


if __name__ == "__main__":
    key = jax.random.PRNGKey(0)
    k_tok, k_par = jax.random.split(key)
    tokens = jax.random.randint(k_tok, (BATCH, SEQ), 0, VOCAB, dtype=jnp.int32)
    params = init_params(k_par)

    out = sentiment_forward(tokens, params)
    out = jax.block_until_ready(out)

    ref = reference_forward(tokens, params)
    assert out.shape == (BATCH, OUT)
    assert jnp.allclose(out, ref, atol=1e-4, rtol=1e-4), (out, ref)
    print("KERNEL_OK")
</pallas_src>

<mosaic_0001>
module attributes {stable_mosaic.version = 11 : i64} {
  func.func @sentiment_kernel(%arg0: memref<16xi32, #tpu.memory_space<smem>>, %arg1: memref<128x32xf32, #tpu.memory_space<vmem>>, %arg2: memref<32x96xf32, #tpu.memory_space<vmem>>, %arg3: memref<32x96xf32, #tpu.memory_space<vmem>>, %arg4: memref<1x96xf32, #tpu.memory_space<vmem>>, %arg5: memref<1x96xf32, #tpu.memory_space<vmem>>, %arg6: memref<32x96xf32, #tpu.memory_space<vmem>>, %arg7: memref<32x96xf32, #tpu.memory_space<vmem>>, %arg8: memref<1x96xf32, #tpu.memory_space<vmem>>, %arg9: memref<1x96xf32, #tpu.memory_space<vmem>>, %arg10: memref<1x32xf32, #tpu.memory_space<vmem>>, %arg11: memref<1x1xf32, #tpu.memory_space<vmem>>, %arg12: memref<2x1xf32, #tpu.memory_space<vmem>>, %arg13: memref<16x32xf32, #tpu.memory_space<vmem>>) attributes {dimension_semantics = [], scalar_prefetch = 0 : i64, scratch_operands = 1 : i64, tpu.core_type = #tpu.core_type<tc>} {
    %c0 = arith.constant 0 : index
    %0 = memref.load %arg0[%c0] : memref<16xi32, #tpu.memory_space<smem>>
    %1 = arith.index_cast %0 : i32 to index
    %c0_0 = arith.constant 0 : index
    %2 = vector.load %arg1[%1, %c0_0] : memref<128x32xf32, #tpu.memory_space<vmem>>, vector<1x32xf32>
    %c0_1 = arith.constant 0 : index
    %c0_2 = arith.constant 0 : index
    %3 = vector.load %arg13[%c0_1, %c0_2] : memref<16x32xf32, #tpu.memory_space<vmem>>, vector<1x32xf32>
    tpu.vector_store %arg13[%c0_1, %c0_2], %2 {strides = array<i32>} : memref<16x32xf32, #tpu.memory_space<vmem>>, vector<1x32xf32>,
    %c1 = arith.constant 1 : index
    %4 = memref.load %arg0[%c1] : memref<16xi32, #tpu.memory_space<smem>>
    %5 = arith.index_cast %4 : i32 to index
    %c0_3 = arith.constant 0 : index
    %6 = vector.load %arg1[%5, %c0_3] : memref<128x32xf32, #tpu.memory_space<vmem>>, vector<1x32xf32>
    %c1_4 = arith.constant 1 : index
    %c0_5 = arith.constant 0 : index
    %7 = vector.load %arg13[%c1_4, %c0_5] : memref<16x32xf32, #tpu.memory_space<vmem>>, vector<1x32xf32>
    tpu.vector_store %arg13[%c1_4, %c0_5], %6 {strides = array<i32>} : memref<16x32xf32, #tpu.memory_space<vmem>>, vector<1x32xf32>,
    %c2 = arith.constant 2 : index
    %8 = memref.load %arg0[%c2] : memref<16xi32, #tpu.memory_space<smem>>
    %9 = arith.index_cast %8 : i32 to index
    %c0_6 = arith.constant 0 : index
    %10 = vector.load %arg1[%9, %c0_6] : memref<128x32xf32, #tpu.memory_space<vmem>>, vector<1x32xf32>
    %c2_7 = arith.constant 2 : index
    %c0_8 = arith.constant 0 : index
    %11 = vector.load %arg13[%c2_7, %c0_8] : memref<16x32xf32, #tpu.memory_space<vmem>>, vector<1x32xf32>
    tpu.vector_store %arg13[%c2_7, %c0_8], %10 {strides = array<i32>} : memref<16x32xf32, #tpu.memory_space<vmem>>, vector<1x32xf32>,
    %c3 = arith.constant 3 : index
    %12 = memref.load %arg0[%c3] : memref<16xi32, #tpu.memory_space<smem>>
    %13 = arith.index_cast %12 : i32 to index
    %c0_9 = arith.constant 0 : index
    %14 = vector.load %arg1[%13, %c0_9] : memref<128x32xf32, #tpu.memory_space<vmem>>, vector<1x32xf32>
    %c3_10 = arith.constant 3 : index
    %c0_11 = arith.constant 0 : index
    %15 = vector.load %arg13[%c3_10, %c0_11] : memref<16x32xf32, #tpu.memory_space<vmem>>, vector<1x32xf32>
    tpu.vector_store %arg13[%c3_10, %c0_11], %14 {strides = array<i32>} : memref<16x32xf32, #tpu.memory_space<vmem>>, vector<1x32xf32>,
    %c4 = arith.constant 4 : index
    %16 = memref.load %arg0[%c4] : memref<16xi32, #tpu.memory_space<smem>>
    %17 = arith.index_cast %16 : i32 to index
    %c0_12 = arith.constant 0 : index
    %18 = vector.load %arg1[%17, %c0_12] : memref<128x32xf32, #tpu.memory_space<vmem>>, vector<1x32xf32>
    %c4_13 = arith.constant 4 : index
    %c0_14 = arith.constant 0 : index
    %19 = vector.load %arg13[%c4_13, %c0_14] : memref<16x32xf32, #tpu.memory_space<vmem>>, vector<1x32xf32>
    tpu.vector_store %arg13[%c4_13, %c0_14], %18 {strides = array<i32>} : memref<16x32xf32, #tpu.memory_space<vmem>>, vector<1x32xf32>,
    %c5 = arith.constant 5 : index
    %20 = memref.load %arg0[%c5] : memref<16xi32, #tpu.memory_space<smem>>
    %21 = arith.index_cast %20 : i32 to index
    %c0_15 = arith.constant 0 : index
    %22 = vector.load %arg1[%21, %c0_15] : memref<128x32xf32, #tpu.memory_space<vmem>>, vector<1x32xf32>
    %c5_16 = arith.constant 5 : index
    %c0_17 = arith.constant 0 : index
    %23 = vector.load %arg13[%c5_16, %c0_17] : memref<16x32xf32, #tpu.memory_space<vmem>>, vector<1x32xf32>
    tpu.vector_store %arg13[%c5_16, %c0_17], %22 {strides = array<i32>} : memref<16x32xf32, #tpu.memory_space<vmem>>, vector<1x32xf32>,
    %c6 = arith.constant 6 : index
    %24 = memref.load %arg0[%c6] : memref<16xi32, #tpu.memory_space<smem>>
    %25 = arith.index_cast %24 : i32 to index
    %c0_18 = arith.constant 0 : index
    %26 = vector.load %arg1[%25, %c0_18] : memref<128x32xf32, #tpu.memory_space<vmem>>, vector<1x32xf32>
    %c6_19 = arith.constant 6 : index
    %c0_20 = arith.constant 0 : index
    %27 = vector.load %arg13[%c6_19, %c0_20] : memref<16x32xf32, #tpu.memory_space<vmem>>, vector<1x32xf32>
    tpu.vector_store %arg13[%c6_19, %c0_20], %26 {strides = array<i32>} : memref<16x32xf32, #tpu.memory_space<vmem>>, vector<1x32xf32>,
    %c7 = arith.constant 7 : index
    %28 = memref.load %arg0[%c7] : memref<16xi32, #tpu.memory_space<smem>>
    %29 = arith.index_cast %28 : i32 to index
    %c0_21 = arith.constant 0 : index
    %30 = vector.load %arg1[%29, %c0_21] : memref<128x32xf32, #tpu.memory_space<vmem>>, vector<1x32xf32>
    %c7_22 = arith.constant 7 : index
    %c0_23 = arith.constant 0 : index
    %31 = vector.load %arg13[%c7_22, %c0_23] : memref<16x32xf32, #tpu.memory_space<vmem>>, vector<1x32xf32>
    tpu.vector_store %arg13[%c7_22, %c0_23], %30 {strides = array<i32>} : memref<16x32xf32, #tpu.memory_space<vmem>>, vector<1x32xf32>,
    %c8 = arith.constant 8 : index
    %32 = memref.load %arg0[%c8] : memref<16xi32, #tpu.memory_space<smem>>
    %33 = arith.index_cast %32 : i32 to index
    %c0_24 = arith.constant 0 : index
    %34 = vector.load %arg1[%33, %c0_24] : memref<128x32xf32, #tpu.memory_space<vmem>>, vector<1x32xf32>
    %c8_25 = arith.constant 8 : index
    %c0_26 = arith.constant 0 : index
    %35 = vector.load %arg13[%c8_25, %c0_26] : memref<16x32xf32, #tpu.memory_space<vmem>>, vector<1x32xf32>
    tpu.vector_store %arg13[%c8_25, %c0_26], %34 {strides = array<i32>} : memref<16x32xf32, #tpu.memory_space<vmem>>, vector<1x32xf32>,
    %c9 = arith.constant 9 : index
    %36 = memref.load %arg0[%c9] : memref<16xi32, #tpu.memory_space<smem>>
    %37 = arith.index_cast %36 : i32 to index
    %c0_27 = arith.constant 0 : index
    %38 = vector.load %arg1[%37, %c0_27] : memref<128x32xf32, #tpu.memory_space<vmem>>, vector<1x32xf32>
    %c9_28 = arith.constant 9 : index
    %c0_29 = arith.constant 0 : index
    %39 = vector.load %arg13[%c9_28, %c0_29] : memref<16x32xf32, #tpu.memory_space<vmem>>, vector<1x32xf32>
    tpu.vector_store %arg13[%c9_28, %c0_29], %38 {strides = array<i32>} : memref<16x32xf32, #tpu.memory_space<vmem>>, vector<1x32xf32>,
    %c10 = arith.constant 10 : index
    %40 = memref.load %arg0[%c10] : memref<16xi32, #tpu.memory_space<smem>>
    %41 = arith.index_cast %40 : i32 to index
    %c0_30 = arith.constant 0 : index
    %42 = vector.load %arg1[%41, %c0_30] : memref<128x32xf32, #tpu.memory_space<vmem>>, vector<1x32xf32>
    %c10_31 = arith.constant 10 : index
    %c0_32 = arith.constant 0 : index
    %43 = vector.load %arg13[%c10_31, %c0_32] : memref<16x32xf32, #tpu.memory_space<vmem>>, vector<1x32xf32>
    tpu.vector_store %arg13[%c10_31, %c0_32], %42 {strides = array<i32>} : memref<16x32xf32, #tpu.memory_space<vmem>>, vector<1x32xf32>,
    %c11 = arith.constant 11 : index
    %44 = memref.load %arg0[%c11] : memref<16xi32, #tpu.memory_space<smem>>
    %45 = arith.index_cast %44 : i32 to index
    %c0_33 = arith.constant 0 : index
    %46 = vector.load %arg1[%45, %c0_33] : memref<128x32xf32, #tpu.memory_space<vmem>>, vector<1x32xf32>
    %c11_34 = arith.constant 11 : index
    %c0_35 = arith.constant 0 : index
    %47 = vector.load %arg13[%c11_34, %c0_35] : memref<16x32xf32, #tpu.memory_space<vmem>>, vector<1x32xf32>
    tpu.vector_store %arg13[%c11_34, %c0_35], %46 {strides = array<i32>} : memref<16x32xf32, #tpu.memory_space<vmem>>, vector<1x32xf32>,
    %c12 = arith.constant 12 : index
    %48 = memref.load %arg0[%c12] : memref<16xi32, #tpu.memory_space<smem>>
    %49 = arith.index_cast %48 : i32 to index
    %c0_36 = arith.constant 0 : index
    %50 = vector.load %arg1[%49, %c0_36] : memref<128x32xf32, #tpu.memory_space<vmem>>, vector<1x32xf32>
    %c12_37 = arith.constant 12 : index
    %c0_38 = arith.constant 0 : index
    %51 = vector.load %arg13[%c12_37, %c0_38] : memref<16x32xf32, #tpu.memory_space<vmem>>, vector<1x32xf32>
    tpu.vector_store %arg13[%c12_37, %c0_38], %50 {strides = array<i32>} : memref<16x32xf32, #tpu.memory_space<vmem>>, vector<1x32xf32>,
    %c13 = arith.constant 13 : index
    %52 = memref.load %arg0[%c13] : memref<16xi32, #tpu.memory_space<smem>>
    %53 = arith.index_cast %52 : i32 to index
    %c0_39 = arith.constant 0 : index
    %54 = vector.load %arg1[%53, %c0_39] : memref<128x32xf32, #tpu.memory_space<vmem>>, vector<1x32xf32>
    %c13_40 = arith.constant 13 : index
    %c0_41 = arith.constant 0 : index
    %55 = vector.load %arg13[%c13_40, %c0_41] : memref<16x32xf32, #tpu.memory_space<vmem>>, vector<1x32xf32>
    tpu.vector_store %arg13[%c13_40, %c0_41], %54 {strides = array<i32>} : memref<16x32xf32, #tpu.memory_space<vmem>>, vector<1x32xf32>,
    %c14 = arith.constant 14 : index
    %56 = memref.load %arg0[%c14] : memref<16xi32, #tpu.memory_space<smem>>
    %57 = arith.index_cast %56 : i32 to index
    %c0_42 = arith.constant 0 : index
    %58 = vector.load %arg1[%57, %c0_42] : memref<128x32xf32, #tpu.memory_space<vmem>>, vector<1x32xf32>
    %c14_43 = arith.constant 14 : index
    %c0_44 = arith.constant 0 : index
    %59 = vector.load %arg13[%c14_43, %c0_44] : memref<16x32xf32, #tpu.memory_space<vmem>>, vector<1x32xf32>
    tpu.vector_store %arg13[%c14_43, %c0_44], %58 {strides = array<i32>} : memref<16x32xf32, #tpu.memory_space<vmem>>, vector<1x32xf32>,
    %c15 = arith.constant 15 : index
    %60 = memref.load %arg0[%c15] : memref<16xi32, #tpu.memory_space<smem>>
    %61 = arith.index_cast %60 : i32 to index
    %c0_45 = arith.constant 0 : index
    %62 = vector.load %arg1[%61, %c0_45] : memref<128x32xf32, #tpu.memory_space<vmem>>, vector<1x32xf32>
    %c15_46 = arith.constant 15 : index
    %c0_47 = arith.constant 0 : index
    %63 = vector.load %arg13[%c15_46, %c0_47] : memref<16x32xf32, #tpu.memory_space<vmem>>, vector<1x32xf32>
    tpu.vector_store %arg13[%c15_46, %c0_47], %62 {strides = array<i32>} : memref<16x32xf32, #tpu.memory_space<vmem>>, vector<1x32xf32>,
    %c0_48 = arith.constant 0 : index
    %c0_49 = arith.constant 0 : index
    %64 = vector.load %arg13[%c0_48, %c0_49] : memref<16x32xf32, #tpu.memory_space<vmem>>, vector<16x32xf32>
    %c0_50 = arith.constant 0 : index
    %c0_51 = arith.constant 0 : index
    %65 = vector.load %arg2[%c0_50, %c0_51] : memref<32x96xf32, #tpu.memory_space<vmem>>, vector<32x96xf32>
    %cst = arith.constant dense<0.000000e+00> : vector<16x96xf32>
    %66 = tpu.matmul %64, %65, %cst {dimension_numbers = #tpu.dot_dimension_numbers<[1], [0], [0], [1], [0, 0, 1, 1], [], []>} : vector<16x32xf32>, vector<32x96xf32>, vector<16x96xf32> -> vector<16x96xf32>
    %c0_52 = arith.constant 0 : index
    %c0_53 = arith.constant 0 : index
    %67 = vector.load %arg4[%c0_52, %c0_53] : memref<1x96xf32, #tpu.memory_space<vmem>>, vector<1x96xf32>
    %68 = vector.broadcast %67 : vector<1x96xf32> to vector<16x96xf32>
    %69 = arith.addf %66, %68 : vector<16x96xf32>
    %c0_54 = arith.constant 0 : index
    %c0_55 = arith.constant 0 : index
    %70 = vector.load %arg3[%c0_54, %c0_55] : memref<32x96xf32, #tpu.memory_space<vmem>>, vector<32x96xf32>
    %c0_56 = arith.constant 0 : index
    %c0_57 = arith.constant 0 : index
    %71 = vector.load %arg5[%c0_56, %c0_57] : memref<1x96xf32, #tpu.memory_space<vmem>>, vector<1x96xf32>
    %c0_58 = arith.constant 0 : index
    %c0_59 = arith.constant 0 : index
    %72 = vector.load %arg6[%c0_58, %c0_59] : memref<32x96xf32, #tpu.memory_space<vmem>>, vector<32x96xf32>
    %c0_60 = arith.constant 0 : index
    %c0_61 = arith.constant 0 : index
    %73 = vector.load %arg8[%c0_60, %c0_61] : memref<1x96xf32, #tpu.memory_space<vmem>>, vector<1x96xf32>
    %c0_62 = arith.constant 0 : index
    %c0_63 = arith.constant 0 : index
    %74 = vector.load %arg7[%c0_62, %c0_63] : memref<32x96xf32, #tpu.memory_space<vmem>>, vector<32x96xf32>
    %c0_64 = arith.constant 0 : index
    %c0_65 = arith.constant 0 : index
    %75 = vector.load %arg9[%c0_64, %c0_65] : memref<1x96xf32, #tpu.memory_space<vmem>>, vector<1x96xf32>
    %cst_66 = arith.constant 0.000000e+00 : f32
    %76 = vector.broadcast %cst_66 : f32 to vector<2x32xf32>
    %cst_67 = arith.constant 0.000000e+00 : f32
    %77 = vector.broadcast %cst_67 : f32 to vector<2x32xf32>
    %78 = vector.extract_strided_slice %69 {offsets = [0, 0], sizes = [2, 96], strides = [1, 1]} : vector<16x96xf32> to vector<2x96xf32>
    %cst_68 = arith.constant dense<0.000000e+00> : vector<2x96xf32>
    %79 = tpu.matmul %76, %70, %cst_68 {dimension_numbers = #tpu.dot_dimension_numbers<[1], [0], [0], [1], [0, 0, 1, 1], [], []>} : vector<2x32xf32>, vector<32x96xf32>, vector<2x96xf32> -> vector<2x96xf32>
    %80 = vector.broadcast %71 : vector<1x96xf32> to vector<2x96xf32>
    %81 = arith.addf %79, %80 : vector<2x96xf32>
    %82 = vector.extract_strided_slice %78 {offsets = [0, 0], sizes = [2, 64], strides = [1, 1]} : vector<2x96xf32> to vector<2x64xf32>
    %83 = vector.extract_strided_slice %81 {offsets = [0, 0], sizes = [2, 64], strides = [1, 1]} : vector<2x96xf32> to vector<2x64xf32>
    %84 = arith.addf %82, %83 : vector<2x64xf32>
    %85 = arith.negf %84 : vector<2x64xf32>
    %86 = math.exp %85 : vector<2x64xf32>
    %cst_69 = arith.constant 1.000000e+00 : f32
    %87 = vector.broadcast %cst_69 : f32 to vector<2x64xf32>
    %88 = arith.addf %87, %86 : vector<2x64xf32>
    %89 = arith.divf %87, %88 : vector<2x64xf32>
    %90 = vector.extract_strided_slice %89 {offsets = [0, 0], sizes = [2, 32], strides = [1, 1]} : vector<2x64xf32> to vector<2x32xf32>
    %91 = vector.extract_strided_slice %89 {offsets = [0, 32], sizes = [2, 32], strides = [1, 1]} : vector<2x64xf32> to vector<2x32xf32>
    %92 = vector.extract_strided_slice %78 {offsets = [0, 64], sizes = [2, 32], strides = [1, 1]} : vector<2x96xf32> to vector<2x32xf32>
    %93 = vector.extract_strided_slice %81 {offsets = [0, 64], sizes = [2, 32], strides = [1, 1]} : vector<2x96xf32> to vector<2x32xf32>
    %94 = arith.mulf %90, %93 : vector<2x32xf32>
    %95 = arith.addf %92, %94 : vector<2x32xf32>
    %96 = math.tanh %95 : vector<2x32xf32>
    %cst_70 = arith.constant 1.000000e+00 : f32
    %97 = vector.broadcast %cst_70 : f32 to vector<2x32xf32>
    %98 = arith.subf %97, %91 : vector<2x32xf32>
    %99 = arith.mulf %98, %96 : vector<2x32xf32>
    %100 = arith.mulf %91, %76 : vector<2x32xf32>
    %101 = arith.addf %99, %100 : vector<2x32xf32>
    %cst_71 = arith.constant dense<0.000000e+00> : vector<2x96xf32>
    %102 = tpu.matmul %101, %72, %cst_71 {dimension_numbers = #tpu.dot_dimension_numbers<[1], [0], [0], [1], [0, 0, 1, 1], [], []>} : vector<2x32xf32>, vector<32x96xf32>, vector<2x96xf32> -> vector<2x96xf32>
    %103 = vector.broadcast %73 : vector<1x96xf32> to vector<2x96xf32>
    %104 = arith.addf %102, %103 : vector<2x96xf32>
    %cst_72 = arith.constant dense<0.000000e+00> : vector<2x96xf32>
    %105 = tpu.matmul %77, %74, %cst_72 {dimension_numbers = #tpu.dot_dimension_numbers<[1], [0], [0], [1], [0, 0, 1, 1], [], []>} : vector<2x32xf32>, vector<32x96xf32>, vector<2x96xf32> -> vector<2x96xf32>
    %106 = vector.broadcast %75 : vector<1x96xf32> to vector<2x96xf32>
    %107 = arith.addf %105, %106 : vector<2x96xf32>
    %108 = vector.extract_strided_slice %104 {offsets = [0, 0], sizes = [2, 64], strides = [1, 1]} : vector<2x96xf32> to vector<2x64xf32>
    %109 = vector.extract_strided_slice %107 {offsets = [0, 0], sizes = [2, 64], strides = [1, 1]} : vector<2x96xf32> to vector<2x64xf32>
    %110 = arith.addf %108, %109 : vector<2x64xf32>
    %111 = arith.negf %110 : vector<2x64xf32>
    %112 = math.exp %111 : vector<2x64xf32>
    %cst_73 = arith.constant 1.000000e+00 : f32
    %113 = vector.broadcast %cst_73 : f32 to vector<2x64xf32>
    %114 = arith.addf %113, %112 : vector<2x64xf32>
    %115 = arith.divf %113, %114 : vector<2x64xf32>
    %116 = vector.extract_strided_slice %115 {offsets = [0, 0], sizes = [2, 32], strides = [1, 1]} : vector<2x64xf32> to vector<2x32xf32>
    %117 = vector.extract_strided_slice %115 {offsets = [0, 32], sizes = [2, 32], strides = [1, 1]} : vector<2x64xf32> to vector<2x32xf32>
    %118 = vector.extract_strided_slice %104 {offsets = [0, 64], sizes = [2, 32], strides = [1, 1]} : vector<2x96xf32> to vector<2x32xf32>
    %119 = vector.extract_strided_slice %107 {offsets = [0, 64], sizes = [2, 32], strides = [1, 1]} : vector<2x96xf32> to vector<2x32xf32>
    %120 = arith.mulf %116, %119 : vector<2x32xf32>
    %121 = arith.addf %118, %120 : vector<2x32xf32>
    %122 = math.tanh %121 : vector<2x32xf32>
    %cst_74 = arith.constant 1.000000e+00 : f32
    %123 = vector.broadcast %cst_74 : f32 to vector<2x32xf32>
    %124 = arith.subf %123, %117 : vector<2x32xf32>
    %125 = arith.mulf %124, %122 : vector<2x32xf32>
    %126 = arith.mulf %117, %77 : vector<2x32xf32>
    %127 = arith.addf %125, %126 : vector<2x32xf32>
    %128 = vector.extract_strided_slice %69 {offsets = [2, 0], sizes = [2, 96], strides = [1, 1]} : vector<16x96xf32> to vector<2x96xf32>
    %cst_75 = arith.constant dense<0.000000e+00> : vector<2x96xf32>
    %129 = tpu.matmul %101, %70, %cst_75 {dimension_numbers = #tpu.dot_dimension_numbers<[1], [0], [0], [1], [0, 0, 1, 1], [], []>} : vector<2x32xf32>, vector<32x96xf32>, vector<2x96xf32> -> vector<2x96xf32>
    %130 = vector.broadcast %71 : vector<1x96xf32> to vector<2x96xf32>
    %131 = arith.addf %129, %130 : vector<2x96xf32>
    %132 = vector.extract_strided_slice %128 {offsets = [0, 0], sizes = [2, 64], strides = [1, 1]} : vector<2x96xf32> to vector<2x64xf32>
    %133 = vector.extract_strided_slice %131 {offsets = [0, 0], sizes = [2, 64], strides = [1, 1]} : vector<2x96xf32> to vector<2x64xf32>
    %134 = arith.addf %132, %133 : vector<2x64xf32>
    %135 = arith.negf %134 : vector<2x64xf32>
    %136 = math.exp %135 : vector<2x64xf32>
    %cst_76 = arith.constant 1.000000e+00 : f32
    %137 = vector.broadcast %cst_76 : f32 to vector<2x64xf32>
    %138 = arith.addf %137, %136 : vector<2x64xf32>
    %139 = arith.divf %137, %138 : vector<2x64xf32>
    %140 = vector.extract_strided_slice %139 {offsets = [0, 0], sizes = [2, 32], strides = [1, 1]} : vector<2x64xf32> to vector<2x32xf32>
    %141 = vector.extract_strided_slice %139 {offsets = [0, 32], sizes = [2, 32], strides = [1, 1]} : vector<2x64xf32> to vector<2x32xf32>
    %142 = vector.extract_strided_slice %128 {offsets = [0, 64], sizes = [2, 32], strides = [1, 1]} : vector<2x96xf32> to vector<2x32xf32>
    %143 = vector.extract_strided_slice %131 {offsets = [0, 64], sizes = [2, 32], strides = [1, 1]} : vector<2x96xf32> to vector<2x32xf32>
    %144 = arith.mulf %140, %143 : vector<2x32xf32>
    %145 = arith.addf %142, %144 : vector<2x32xf32>
    %146 = math.tanh %145 : vector<2x32xf32>
    %cst_77 = arith.constant 1.000000e+00 : f32
    %147 = vector.broadcast %cst_77 : f32 to vector<2x32xf32>
    %148 = arith.subf %147, %141 : vector<2x32xf32>
    %149 = arith.mulf %148, %146 : vector<2x32xf32>
    %150 = arith.mulf %141, %101 : vector<2x32xf32>
    %151 = arith.addf %149, %150 : vector<2x32xf32>
    %cst_78 = arith.constant dense<0.000000e+00> : vector<2x96xf32>
    %152 = tpu.matmul %151, %72, %cst_78 {dimension_numbers = #tpu.dot_dimension_numbers<[1], [0], [0], [1], [0, 0, 1, 1], [], []>} : vector<2x32xf32>, vector<32x96xf32>, vector<2x96xf32> -> vector<2x96xf32>
    %153 = vector.broadcast %73 : vector<1x96xf32> to vector<2x96xf32>
    %154 = arith.addf %152, %153 : vector<2x96xf32>
    %cst_79 = arith.constant dense<0.000000e+00> : vector<2x96xf32>
    %155 = tpu.matmul %127, %74, %cst_79 {dimension_numbers = #tpu.dot_dimension_numbers<[1], [0], [0], [1], [0, 0, 1, 1], [], []>} : vector<2x32xf32>, vector<32x96xf32>, vector<2x96xf32> -> vector<2x96xf32>
    %156 = vector.broadcast %75 : vector<1x96xf32> to vector<2x96xf32>
    %157 = arith.addf %155, %156 : vector<2x96xf32>
    %158 = vector.extract_strided_slice %154 {offsets = [0, 0], sizes = [2, 64], strides = [1, 1]} : vector<2x96xf32> to vector<2x64xf32>
    %159 = vector.extract_strided_slice %157 {offsets = [0, 0], sizes = [2, 64], strides = [1, 1]} : vector<2x96xf32> to vector<2x64xf32>
    %160 = arith.addf %158, %159 : vector<2x64xf32>
    %161 = arith.negf %160 : vector<2x64xf32>
    %162 = math.exp %161 : vector<2x64xf32>
    %cst_80 = arith.constant 1.000000e+00 : f32
    %163 = vector.broadcast %cst_80 : f32 to vector<2x64xf32>
    %164 = arith.addf %163, %162 : vector<2x64xf32>
    %165 = arith.divf %163, %164 : vector<2x64xf32>
    %166 = vector.extract_strided_slice %165 {offsets = [0, 0], sizes = [2, 32], strides = [1, 1]} : vector<2x64xf32> to vector<2x32xf32>
    %167 = vector.extract_strided_slice %165 {offsets = [0, 32], sizes = [2, 32], strides = [1, 1]} : vector<2x64xf32> to vector<2x32xf32>
    %168 = vector.extract_strided_slice %154 {offsets = [0, 64], sizes = [2, 32], strides = [1, 1]} : vector<2x96xf32> to vector<2x32xf32>
    %169 = vector.extract_strided_slice %157 {offsets = [0, 64], sizes = [2, 32], strides = [1, 1]} : vector<2x96xf32> to vector<2x32xf32>
    %170 = arith.mulf %166, %169 : vector<2x32xf32>
    %171 = arith.addf %168, %170 : vector<2x32xf32>
    %172 = math.tanh %171 : vector<2x32xf32>
    %cst_81 = arith.constant 1.000000e+00 : f32
    %173 = vector.broadcast %cst_81 : f32 to vector<2x32xf32>
    %174 = arith.subf %173, %167 : vector<2x32xf32>
    %175 = arith.mulf %174, %172 : vector<2x32xf32>
    %176 = arith.mulf %167, %127 : vector<2x32xf32>
    %177 = arith.addf %175, %176 : vector<2x32xf32>
    %178 = vector.extract_strided_slice %69 {offsets = [4, 0], sizes = [2, 96], strides = [1, 1]} : vector<16x96xf32> to vector<2x96xf32>
    %cst_82 = arith.constant dense<0.000000e+00> : vector<2x96xf32>
    %179 = tpu.matmul %151, %70, %cst_82 {dimension_numbers = #tpu.dot_dimension_numbers<[1], [0], [0], [1], [0, 0, 1, 1], [], []>} : vector<2x32xf32>, vector<32x96xf32>, vector<2x96xf32> -> vector<2x96xf32>
    %180 = vector.broadcast %71 : vector<1x96xf32> to vector<2x96xf32>
    %181 = arith.addf %179, %180 : vector<2x96xf32>
    %182 = vector.extract_strided_slice %178 {offsets = [0, 0], sizes = [2, 64], strides = [1, 1]} : vector<2x96xf32> to vector<2x64xf32>
    %183 = vector.extract_strided_slice %181 {offsets = [0, 0], sizes = [2, 64], strides = [1, 1]} : vector<2x96xf32> to vector<2x64xf32>
    %184 = arith.addf %182, %183 : vector<2x64xf32>
    %185 = arith.negf %184 : vector<2x64xf32>
    %186 = math.exp %185 : vector<2x64xf32>
    %cst_83 = arith.constant 1.000000e+00 : f32
    %187 = vector.broadcast %cst_83 : f32 to vector<2x64xf32>
    %188 = arith.addf %187, %186 : vector<2x64xf32>
    %189 = arith.divf %187, %188 : vector<2x64xf32>
    %190 = vector.extract_strided_slice %189 {offsets = [0, 0], sizes = [2, 32], strides = [1, 1]} : vector<2x64xf32> to vector<2x32xf32>
    %191 = vector.extract_strided_slice %189 {offsets = [0, 32], sizes = [2, 32], strides = [1, 1]} : vector<2x64xf32> to vector<2x32xf32>
    %192 = vector.extract_strided_slice %178 {offsets = [0, 64], sizes = [2, 32], strides = [1, 1]} : vector<2x96xf32> to vector<2x32xf32>
    %193 = vector.extract_strided_slice %181 {offsets = [0, 64], sizes = [2, 32], strides = [1, 1]} : vector<2x96xf32> to vector<2x32xf32>
    %194 = arith.mulf %190, %193 : vector<2x32xf32>
    %195 = arith.addf %192, %194 : vector<2x32xf32>
    %196 = math.tanh %195 : vector<2x32xf32>
    %cst_84 = arith.constant 1.000000e+00 : f32
    %197 = vector.broadcast %cst_84 : f32 to vector<2x32xf32>
    %198 = arith.subf %197, %191 : vector<2x32xf32>
    %199 = arith.mulf %198, %196 : vector<2x32xf32>
    %200 = arith.mulf %191, %151 : vector<2x32xf32>
    %201 = arith.addf %199, %200 : vector<2x32xf32>
    %cst_85 = arith.constant dense<0.000000e+00> : vector<2x96xf32>
    %202 = tpu.matmul %201, %72, %cst_85 {dimension_numbers = #tpu.dot_dimension_numbers<[1], [0], [0], [1], [0, 0, 1, 1], [], []>} : vector<2x32xf32>, vector<32x96xf32>, vector<2x96xf32> -> vector<2x96xf32>
    %203 = vector.broadcast %73 : vector<1x96xf32> to vector<2x96xf32>
    %204 = arith.addf %202, %203 : vector<2x96xf32>
    %cst_86 = arith.constant dense<0.000000e+00> : vector<2x96xf32>
    %205 = tpu.matmul %177, %74, %cst_86 {dimension_numbers = #tpu.dot_dimension_numbers<[1], [0], [0], [1], [0, 0, 1, 1], [], []>} : vector<2x32xf32>, vector<32x96xf32>, vector<2x96xf32> -> vector<2x96xf32>
    %206 = vector.broadcast %75 : vector<1x96xf32> to vector<2x96xf32>
    %207 = arith.addf %205, %206 : vector<2x96xf32>
    %208 = vector.extract_strided_slice %204 {offsets = [0, 0], sizes = [2, 64], strides = [1, 1]} : vector<2x96xf32> to vector<2x64xf32>
    %209 = vector.extract_strided_slice %207 {offsets = [0, 0], sizes = [2, 64], strides = [1, 1]} : vector<2x96xf32> to vector<2x64xf32>
    %210 = arith.addf %208, %209 : vector<2x64xf32>
    %211 = arith.negf %210 : vector<2x64xf32>
    %212 = math.exp %211 : vector<2x64xf32>
    %cst_87 = arith.constant 1.000000e+00 : f32
    %213 = vector.broadcast %cst_87 : f32 to vector<2x64xf32>
    %214 = arith.addf %213, %212 : vector<2x64xf32>
    %215 = arith.divf %213, %214 : vector<2x64xf32>
    %216 = vector.extract_strided_slice %215 {offsets = [0, 0], sizes = [2, 32], strides = [1, 1]} : vector<2x64xf32> to vector<2x32xf32>
    %217 = vector.extract_strided_slice %215 {offsets = [0, 32], sizes = [2, 32], strides = [1, 1]} : vector<2x64xf32> to vector<2x32xf32>
    %218 = vector.extract_strided_slice %204 {offsets = [0, 64], sizes = [2, 32], strides = [1, 1]} : vector<2x96xf32> to vector<2x32xf32>
    %219 = vector.extract_strided_slice %207 {offsets = [0, 64], sizes = [2, 32], strides = [1, 1]} : vector<2x96xf32> to vector<2x32xf32>
    %220 = arith.mulf %216, %219 : vector<2x32xf32>
    %221 = arith.addf %218, %220 : vector<2x32xf32>
    %222 = math.tanh %221 : vector<2x32xf32>
    %cst_88 = arith.constant 1.000000e+00 : f32
    %223 = vector.broadcast %cst_88 : f32 to vector<2x32xf32>
    %224 = arith.subf %223, %217 : vector<2x32xf32>
    %225 = arith.mulf %224, %222 : vector<2x32xf32>
    %226 = arith.mulf %217, %177 : vector<2x32xf32>
    %227 = arith.addf %225, %226 : vector<2x32xf32>
    %228 = vector.extract_strided_slice %69 {offsets = [6, 0], sizes = [2, 96], strides = [1, 1]} : vector<16x96xf32> to vector<2x96xf32>
    %cst_89 = arith.constant dense<0.000000e+00> : vector<2x96xf32>
    %229 = tpu.matmul %201, %70, %cst_89 {dimension_numbers = #tpu.dot_dimension_numbers<[1], [0], [0], [1], [0, 0, 1, 1], [], []>} : vector<2x32xf32>, vector<32x96xf32>, vector<2x96xf32> -> vector<2x96xf32>
    %230 = vector.broadcast %71 : vector<1x96xf32> to vector<2x96xf32>
    %231 = arith.addf %229, %230 : vector<2x96xf32>
    %232 = vector.extract_strided_slice %228 {offsets = [0, 0], sizes = [2, 64], strides = [1, 1]} : vector<2x96xf32> to vector<2x64xf32>
    %233 = vector.extract_strided_slice %231 {offsets = [0, 0], sizes = [2, 64], strides = [1, 1]} : vector<2x96xf32> to vector<2x64xf32>
    %234 = arith.addf %232, %233 : vector<2x64xf32>
    %235 = arith.negf %234 : vector<2x64xf32>
    %236 = math.exp %235 : vector<2x64xf32>
    %cst_90 = arith.constant 1.000000e+00 : f32
    %237 = vector.broadcast %cst_90 : f32 to vector<2x64xf32>
    %238 = arith.addf %237, %236 : vector<2x64xf32>
    %239 = arith.divf %237, %238 : vector<2x64xf32>
    %240 = vector.extract_strided_slice %239 {offsets = [0, 0], sizes = [2, 32], strides = [1, 1]} : vector<2x64xf32> to vector<2x32xf32>
    %241 = vector.extract_strided_slice %239 {offsets = [0, 32], sizes = [2, 32], strides = [1, 1]} : vector<2x64xf32> to vector<2x32xf32>
    %242 = vector.extract_strided_slice %228 {offsets = [0, 64], sizes = [2, 32], strides = [1, 1]} : vector<2x96xf32> to vector<2x32xf32>
    %243 = vector.extract_strided_slice %231 {offsets = [0, 64], sizes = [2, 32], strides = [1, 1]} : vector<2x96xf32> to vector<2x32xf32>
    %244 = arith.mulf %240, %243 : vector<2x32xf32>
    %245 = arith.addf %242, %244 : vector<2x32xf32>
    %246 = math.tanh %245 : vector<2x32xf32>
    %cst_91 = arith.constant 1.000000e+00 : f32
    %247 = vector.broadcast %cst_91 : f32 to vector<2x32xf32>
    %248 = arith.subf %247, %241 : vector<2x32xf32>
    %249 = arith.mulf %248, %246 : vector<2x32xf32>
    %250 = arith.mulf %241, %201 : vector<2x32xf32>
    %251 = arith.addf %249, %250 : vector<2x32xf32>
    %cst_92 = arith.constant dense<0.000000e+00> : vector<2x96xf32>
    %252 = tpu.matmul %251, %72, %cst_92 {dimension_numbers = #tpu.dot_dimension_numbers<[1], [0], [0], [1], [0, 0, 1, 1], [], []>} : vector<2x32xf32>, vector<32x96xf32>, vector<2x96xf32> -> vector<2x96xf32>
    %253 = vector.broadcast %73 : vector<1x96xf32> to vector<2x96xf32>
    %254 = arith.addf %252, %253 : vector<2x96xf32>
    %cst_93 = arith.constant dense<0.000000e+00> : vector<2x96xf32>
    %255 = tpu.matmul %227, %74, %cst_93 {dimension_numbers = #tpu.dot_dimension_numbers<[1], [0], [0], [1], [0, 0, 1, 1], [], []>} : vector<2x32xf32>, vector<32x96xf32>, vector<2x96xf32> -> vector<2x96xf32>
    %256 = vector.broadcast %75 : vector<1x96xf32> to vector<2x96xf32>
    %257 = arith.addf %255, %256 : vector<2x96xf32>
    %258 = vector.extract_strided_slice %254 {offsets = [0, 0], sizes = [2, 64], strides = [1, 1]} : vector<2x96xf32> to vector<2x64xf32>
    %259 = vector.extract_strided_slice %257 {offsets = [0, 0], sizes = [2, 64], strides = [1, 1]} : vector<2x96xf32> to vector<2x64xf32>
    %260 = arith.addf %258, %259 : vector<2x64xf32>
    %261 = arith.negf %260 : vector<2x64xf32>
    %262 = math.exp %261 : vector<2x64xf32>
    %cst_94 = arith.constant 1.000000e+00 : f32
    %263 = vector.broadcast %cst_94 : f32 to vector<2x64xf32>
    %264 = arith.addf %263, %262 : vector<2x64xf32>
    %265 = arith.divf %263, %264 : vector<2x64xf32>
    %266 = vector.extract_strided_slice %265 {offsets = [0, 0], sizes = [2, 32], strides = [1, 1]} : vector<2x64xf32> to vector<2x32xf32>
    %267 = vector.extract_strided_slice %265 {offsets = [0, 32], sizes = [2, 32], strides = [1, 1]} : vector<2x64xf32> to vector<2x32xf32>
    %268 = vector.extract_strided_slice %254 {offsets = [0, 64], sizes = [2, 32], strides = [1, 1]} : vector<2x96xf32> to vector<2x32xf32>
    %269 = vector.extract_strided_slice %257 {offsets = [0, 64], sizes = [2, 32], strides = [1, 1]} : vector<2x96xf32> to vector<2x32xf32>
    %270 = arith.mulf %266, %269 : vector<2x32xf32>
    %271 = arith.addf %268, %270 : vector<2x32xf32>
    %272 = math.tanh %271 : vector<2x32xf32>
    %cst_95 = arith.constant 1.000000e+00 : f32
    %273 = vector.broadcast %cst_95 : f32 to vector<2x32xf32>
    %274 = arith.subf %273, %267 : vector<2x32xf32>
    %275 = arith.mulf %274, %272 : vector<2x32xf32>
    %276 = arith.mulf %267, %227 : vector<2x32xf32>
    %277 = arith.addf %275, %276 : vector<2x32xf32>
    %278 = vector.extract_strided_slice %69 {offsets = [8, 0], sizes = [2, 96], strides = [1, 1]} : vector<16x96xf32> to vector<2x96xf32>
    %cst_96 = arith.constant dense<0.000000e+00> : vector<2x96xf32>
    %279 = tpu.matmul %251, %70, %cst_96 {dimension_numbers = #tpu.dot_dimension_numbers<[1], [0], [0], [1], [0, 0, 1, 1], [], []>} : vector<2x32xf32>, vector<32x96xf32>, vector<2x96xf32> -> vector<2x96xf32>
    %280 = vector.broadcast %71 : vector<1x96xf32> to vector<2x96xf32>
    %281 = arith.addf %279, %280 : vector<2x96xf32>
    %282 = vector.extract_strided_slice %278 {offsets = [0, 0], sizes = [2, 64], strides = [1, 1]} : vector<2x96xf32> to vector<2x64xf32>
    %283 = vector.extract_strided_slice %281 {offsets = [0, 0], sizes = [2, 64], strides = [1, 1]} : vector<2x96xf32> to vector<2x64xf32>
    %284 = arith.addf %282, %283 : vector<2x64xf32>
    %285 = arith.negf %284 : vector<2x64xf32>
    %286 = math.exp %285 : vector<2x64xf32>
    %cst_97 = arith.constant 1.000000e+00 : f32
    %287 = vector.broadcast %cst_97 : f32 to vector<2x64xf32>
    %288 = arith.addf %287, %286 : vector<2x64xf32>
    %289 = arith.divf %287, %288 : vector<2x64xf32>
    %290 = vector.extract_strided_slice %289 {offsets = [0, 0], sizes = [2, 32], strides = [1, 1]} : vector<2x64xf32> to vector<2x32xf32>
    %291 = vector.extract_strided_slice %289 {offsets = [0, 32], sizes = [2, 32], strides = [1, 1]} : vector<2x64xf32> to vector<2x32xf32>
    %292 = vector.extract_strided_slice %278 {offsets = [0, 64], sizes = [2, 32], strides = [1, 1]} : vector<2x96xf32> to vector<2x32xf32>
    %293 = vector.extract_strided_slice %281 {offsets = [0, 64], sizes = [2, 32], strides = [1, 1]} : vector<2x96xf32> to vector<2x32xf32>
    %294 = arith.mulf %290, %293 : vector<2x32xf32>
    %295 = arith.addf %292, %294 : vector<2x32xf32>
    %296 = math.tanh %295 : vector<2x32xf32>
    %cst_98 = arith.constant 1.000000e+00 : f32
    %297 = vector.broadcast %cst_98 : f32 to vector<2x32xf32>
    %298 = arith.subf %297, %291 : vector<2x32xf32>
    %299 = arith.mulf %298, %296 : vector<2x32xf32>
    %300 = arith.mulf %291, %251 : vector<2x32xf32>
    %301 = arith.addf %299, %300 : vector<2x32xf32>
    %cst_99 = arith.constant dense<0.000000e+00> : vector<2x96xf32>
    %302 = tpu.matmul %301, %72, %cst_99 {dimension_numbers = #tpu.dot_dimension_numbers<[1], [0], [0], [1], [0, 0, 1, 1], [], []>} : vector<2x32xf32>, vector<32x96xf32>, vector<2x96xf32> -> vector<2x96xf32>
    %303 = vector.broadcast %73 : vector<1x96xf32> to vector<2x96xf32>
    %304 = arith.addf %302, %303 : vector<2x96xf32>
    %cst_100 = arith.constant dense<0.000000e+00> : vector<2x96xf32>
    %305 = tpu.matmul %277, %74, %cst_100 {dimension_numbers = #tpu.dot_dimension_numbers<[1], [0], [0], [1], [0, 0, 1, 1], [], []>} : vector<2x32xf32>, vector<32x96xf32>, vector<2x96xf32> -> vector<2x96xf32>
    %306 = vector.broadcast %75 : vector<1x96xf32> to vector<2x96xf32>
    %307 = arith.addf %305, %306 : vector<2x96xf32>
    %308 = vector.extract_strided_slice %304 {offsets = [0, 0], sizes = [2, 64], strides = [1, 1]} : vector<2x96xf32> to vector<2x64xf32>
    %309 = vector.extract_strided_slice %307 {offsets = [0, 0], sizes = [2, 64], strides = [1, 1]} : vector<2x96xf32> to vector<2x64xf32>
    %310 = arith.addf %308, %309 : vector<2x64xf32>
    %311 = arith.negf %310 : vector<2x64xf32>
    %312 = math.exp %311 : vector<2x64xf32>
    %cst_101 = arith.constant 1.000000e+00 : f32
    %313 = vector.broadcast %cst_101 : f32 to vector<2x64xf32>
    %314 = arith.addf %313, %312 : vector<2x64xf32>
    %315 = arith.divf %313, %314 : vector<2x64xf32>
    %316 = vector.extract_strided_slice %315 {offsets = [0, 0], sizes = [2, 32], strides = [1, 1]} : vector<2x64xf32> to vector<2x32xf32>
    %317 = vector.extract_strided_slice %315 {offsets = [0, 32], sizes = [2, 32], strides = [1, 1]} : vector<2x64xf32> to vector<2x32xf32>
    %318 = vector.extract_strided_slice %304 {offsets = [0, 64], sizes = [2, 32], strides = [1, 1]} : vector<2x96xf32> to vector<2x32xf32>
    %319 = vector.extract_strided_slice %307 {offsets = [0, 64], sizes = [2, 32], strides = [1, 1]} : vector<2x96xf32> to vector<2x32xf32>
    %320 = arith.mulf %316, %319 : vector<2x32xf32>
    %321 = arith.addf %318, %320 : vector<2x32xf32>
    %322 = math.tanh %321 : vector<2x32xf32>
    %cst_102 = arith.constant 1.000000e+00 : f32
    %323 = vector.broadcast %cst_102 : f32 to vector<2x32xf32>
    %324 = arith.subf %323, %317 : vector<2x32xf32>
    %325 = arith.mulf %324, %322 : vector<2x32xf32>
    %326 = arith.mulf %317, %277 : vector<2x32xf32>
    %327 = arith.addf %325, %326 : vector<2x32xf32>
    %328 = vector.extract_strided_slice %69 {offsets = [10, 0], sizes = [2, 96], strides = [1, 1]} : vector<16x96xf32> to vector<2x96xf32>
    %cst_103 = arith.constant dense<0.000000e+00> : vector<2x96xf32>
    %329 = tpu.matmul %301, %70, %cst_103 {dimension_numbers = #tpu.dot_dimension_numbers<[1], [0], [0], [1], [0, 0, 1, 1], [], []>} : vector<2x32xf32>, vector<32x96xf32>, vector<2x96xf32> -> vector<2x96xf32>
    %330 = vector.broadcast %71 : vector<1x96xf32> to vector<2x96xf32>
    %331 = arith.addf %329, %330 : vector<2x96xf32>
    %332 = vector.extract_strided_slice %328 {offsets = [0, 0], sizes = [2, 64], strides = [1, 1]} : vector<2x96xf32> to vector<2x64xf32>
    %333 = vector.extract_strided_slice %331 {offsets = [0, 0], sizes = [2, 64], strides = [1, 1]} : vector<2x96xf32> to vector<2x64xf32>
    %334 = arith.addf %332, %333 : vector<2x64xf32>
    %335 = arith.negf %334 : vector<2x64xf32>
    %336 = math.exp %335 : vector<2x64xf32>
    %cst_104 = arith.constant 1.000000e+00 : f32
    %337 = vector.broadcast %cst_104 : f32 to vector<2x64xf32>
    %338 = arith.addf %337, %336 : vector<2x64xf32>
    %339 = arith.divf %337, %338 : vector<2x64xf32>
    %340 = vector.extract_strided_slice %339 {offsets = [0, 0], sizes = [2, 32], strides = [1, 1]} : vector<2x64xf32> to vector<2x32xf32>
    %341 = vector.extract_strided_slice %339 {offsets = [0, 32], sizes = [2, 32], strides = [1, 1]} : vector<2x64xf32> to vector<2x32xf32>
    %342 = vector.extract_strided_slice %328 {offsets = [0, 64], sizes = [2, 32], strides = [1, 1]} : vector<2x96xf32> to vector<2x32xf32>
    %343 = vector.extract_strided_slice %331 {offsets = [0, 64], sizes = [2, 32], strides = [1, 1]} : vector<2x96xf32> to vector<2x32xf32>
    %344 = arith.mulf %340, %343 : vector<2x32xf32>
    %345 = arith.addf %342, %344 : vector<2x32xf32>
    %346 = math.tanh %345 : vector<2x32xf32>
    %cst_105 = arith.constant 1.000000e+00 : f32
    %347 = vector.broadcast %cst_105 : f32 to vector<2x32xf32>
    %348 = arith.subf %347, %341 : vector<2x32xf32>
    %349 = arith.mulf %348, %346 : vector<2x32xf32>
    %350 = arith.mulf %341, %301 : vector<2x32xf32>
    %351 = arith.addf %349, %350 : vector<2x32xf32>
    %cst_106 = arith.constant dense<0.000000e+00> : vector<2x96xf32>
    %352 = tpu.matmul %351, %72, %cst_106 {dimension_numbers = #tpu.dot_dimension_numbers<[1], [0], [0], [1], [0, 0, 1, 1], [], []>} : vector<2x32xf32>, vector<32x96xf32>, vector<2x96xf32> -> vector<2x96xf32>
    %353 = vector.broadcast %73 : vector<1x96xf32> to vector<2x96xf32>
    %354 = arith.addf %352, %353 : vector<2x96xf32>
    %cst_107 = arith.constant dense<0.000000e+00> : vector<2x96xf32>
    %355 = tpu.matmul %327, %74, %cst_107 {dimension_numbers = #tpu.dot_dimension_numbers<[1], [0], [0], [1], [0, 0, 1, 1], [], []>} : vector<2x32xf32>, vector<32x96xf32>, vector<2x96xf32> -> vector<2x96xf32>
    %356 = vector.broadcast %75 : vector<1x96xf32> to vector<2x96xf32>
    %357 = arith.addf %355, %356 : vector<2x96xf32>
    %358 = vector.extract_strided_slice %354 {offsets = [0, 0], sizes = [2, 64], strides = [1, 1]} : vector<2x96xf32> to vector<2x64xf32>
    %359 = vector.extract_strided_slice %357 {offsets = [0, 0], sizes = [2, 64], strides = [1, 1]} : vector<2x96xf32> to vector<2x64xf32>
    %360 = arith.addf %358, %359 : vector<2x64xf32>
    %361 = arith.negf %360 : vector<2x64xf32>
    %362 = math.exp %361 : vector<2x64xf32>
    %cst_108 = arith.constant 1.000000e+00 : f32
    %363 = vector.broadcast %cst_108 : f32 to vector<2x64xf32>
    %364 = arith.addf %363, %362 : vector<2x64xf32>
    %365 = arith.divf %363, %364 : vector<2x64xf32>
    %366 = vector.extract_strided_slice %365 {offsets = [0, 0], sizes = [2, 32], strides = [1, 1]} : vector<2x64xf32> to vector<2x32xf32>
    %367 = vector.extract_strided_slice %365 {offsets = [0, 32], sizes = [2, 32], strides = [1, 1]} : vector<2x64xf32> to vector<2x32xf32>
    %368 = vector.extract_strided_slice %354 {offsets = [0, 64], sizes = [2, 32], strides = [1, 1]} : vector<2x96xf32> to vector<2x32xf32>
    %369 = vector.extract_strided_slice %357 {offsets = [0, 64], sizes = [2, 32], strides = [1, 1]} : vector<2x96xf32> to vector<2x32xf32>
    %370 = arith.mulf %366, %369 : vector<2x32xf32>
    %371 = arith.addf %368, %370 : vector<2x32xf32>
    %372 = math.tanh %371 : vector<2x32xf32>
    %cst_109 = arith.constant 1.000000e+00 : f32
    %373 = vector.broadcast %cst_109 : f32 to vector<2x32xf32>
    %374 = arith.subf %373, %367 : vector<2x32xf32>
    %375 = arith.mulf %374, %372 : vector<2x32xf32>
    %376 = arith.mulf %367, %327 : vector<2x32xf32>
    %377 = arith.addf %375, %376 : vector<2x32xf32>
    %378 = vector.extract_strided_slice %69 {offsets = [12, 0], sizes = [2, 96], strides = [1, 1]} : vector<16x96xf32> to vector<2x96xf32>
    %cst_110 = arith.constant dense<0.000000e+00> : vector<2x96xf32>
    %379 = tpu.matmul %351, %70, %cst_110 {dimension_numbers = #tpu.dot_dimension_numbers<[1], [0], [0], [1], [0, 0, 1, 1], [], []>} : vector<2x32xf32>, vector<32x96xf32>, vector<2x96xf32> -> vector<2x96xf32>
    %380 = vector.broadcast %71 : vector<1x96xf32> to vector<2x96xf32>
    %381 = arith.addf %379, %380 : vector<2x96xf32>
    %382 = vector.extract_strided_slice %378 {offsets = [0, 0], sizes = [2, 64], strides = [1, 1]} : vector<2x96xf32> to vector<2x64xf32>
    %383 = vector.extract_strided_slice %381 {offsets = [0, 0], sizes = [2, 64], strides = [1, 1]} : vector<2x96xf32> to vector<2x64xf32>
    %384 = arith.addf %382, %383 : vector<2x64xf32>
    %385 = arith.negf %384 : vector<2x64xf32>
    %386 = math.exp %385 : vector<2x64xf32>
    %cst_111 = arith.constant 1.000000e+00 : f32
    %387 = vector.broadcast %cst_111 : f32 to vector<2x64xf32>
    %388 = arith.addf %387, %386 : vector<2x64xf32>
    %389 = arith.divf %387, %388 : vector<2x64xf32>
    %390 = vector.extract_strided_slice %389 {offsets = [0, 0], sizes = [2, 32], strides = [1, 1]} : vector<2x64xf32> to vector<2x32xf32>
    %391 = vector.extract_strided_slice %389 {offsets = [0, 32], sizes = [2, 32], strides = [1, 1]} : vector<2x64xf32> to vector<2x32xf32>
    %392 = vector.extract_strided_slice %378 {offsets = [0, 64], sizes = [2, 32], strides = [1, 1]} : vector<2x96xf32> to vector<2x32xf32>
    %393 = vector.extract_strided_slice %381 {offsets = [0, 64], sizes = [2, 32], strides = [1, 1]} : vector<2x96xf32> to vector<2x32xf32>
    %394 = arith.mulf %390, %393 : vector<2x32xf32>
    %395 = arith.addf %392, %394 : vector<2x32xf32>
    %396 = math.tanh %395 : vector<2x32xf32>
    %cst_112 = arith.constant 1.000000e+00 : f32
    %397 = vector.broadcast %cst_112 : f32 to vector<2x32xf32>
    %398 = arith.subf %397, %391 : vector<2x32xf32>
    %399 = arith.mulf %398, %396 : vector<2x32xf32>
    %400 = arith.mulf %391, %351 : vector<2x32xf32>
    %401 = arith.addf %399, %400 : vector<2x32xf32>
    %cst_113 = arith.constant dense<0.000000e+00> : vector<2x96xf32>
    %402 = tpu.matmul %401, %72, %cst_113 {dimension_numbers = #tpu.dot_dimension_numbers<[1], [0], [0], [1], [0, 0, 1, 1], [], []>} : vector<2x32xf32>, vector<32x96xf32>, vector<2x96xf32> -> vector<2x96xf32>
    %403 = vector.broadcast %73 : vector<1x96xf32> to vector<2x96xf32>
    %404 = arith.addf %402, %403 : vector<2x96xf32>
    %cst_114 = arith.constant dense<0.000000e+00> : vector<2x96xf32>
    %405 = tpu.matmul %377, %74, %cst_114 {dimension_numbers = #tpu.dot_dimension_numbers<[1], [0], [0], [1], [0, 0, 1, 1], [], []>} : vector<2x32xf32>, vector<32x96xf32>, vector<2x96xf32> -> vector<2x96xf32>
    %406 = vector.broadcast %75 : vector<1x96xf32> to vector<2x96xf32>
    %407 = arith.addf %405, %406 : vector<2x96xf32>
    %408 = vector.extract_strided_slice %404 {offsets = [0, 0], sizes = [2, 64], strides = [1, 1]} : vector<2x96xf32> to vector<2x64xf32>
    %409 = vector.extract_strided_slice %407 {offsets = [0, 0], sizes = [2, 64], strides = [1, 1]} : vector<2x96xf32> to vector<2x64xf32>
    %410 = arith.addf %408, %409 : vector<2x64xf32>
    %411 = arith.negf %410 : vector<2x64xf32>
    %412 = math.exp %411 : vector<2x64xf32>
    %cst_115 = arith.constant 1.000000e+00 : f32
    %413 = vector.broadcast %cst_115 : f32 to vector<2x64xf32>
    %414 = arith.addf %413, %412 : vector<2x64xf32>
    %415 = arith.divf %413, %414 : vector<2x64xf32>
    %416 = vector.extract_strided_slice %415 {offsets = [0, 0], sizes = [2, 32], strides = [1, 1]} : vector<2x64xf32> to vector<2x32xf32>
    %417 = vector.extract_strided_slice %415 {offsets = [0, 32], sizes = [2, 32], strides = [1, 1]} : vector<2x64xf32> to vector<2x32xf32>
    %418 = vector.extract_strided_slice %404 {offsets = [0, 64], sizes = [2, 32], strides = [1, 1]} : vector<2x96xf32> to vector<2x32xf32>
    %419 = vector.extract_strided_slice %407 {offsets = [0, 64], sizes = [2, 32], strides = [1, 1]} : vector<2x96xf32> to vector<2x32xf32>
    %420 = arith.mulf %416, %419 : vector<2x32xf32>
    %421 = arith.addf %418, %420 : vector<2x32xf32>
    %422 = math.tanh %421 : vector<2x32xf32>
    %cst_116 = arith.constant 1.000000e+00 : f32
    %423 = vector.broadcast %cst_116 : f32 to vector<2x32xf32>
    %424 = arith.subf %423, %417 : vector<2x32xf32>
    %425 = arith.mulf %424, %422 : vector<2x32xf32>
    %426 = arith.mulf %417, %377 : vector<2x32xf32>
    %427 = arith.addf %425, %426 : vector<2x32xf32>
    %428 = vector.extract_strided_slice %69 {offsets = [14, 0], sizes = [2, 96], strides = [1, 1]} : vector<16x96xf32> to vector<2x96xf32>
    %cst_117 = arith.constant dense<0.000000e+00> : vector<2x96xf32>
    %429 = tpu.matmul %401, %70, %cst_117 {dimension_numbers = #tpu.dot_dimension_numbers<[1], [0], [0], [1], [0, 0, 1, 1], [], []>} : vector<2x32xf32>, vector<32x96xf32>, vector<2x96xf32> -> vector<2x96xf32>
    %430 = vector.broadcast %71 : vector<1x96xf32> to vector<2x96xf32>
    %431 = arith.addf %429, %430 : vector<2x96xf32>
    %432 = vector.extract_strided_slice %428 {offsets = [0, 0], sizes = [2, 64], strides = [1, 1]} : vector<2x96xf32> to vector<2x64xf32>
    %433 = vector.extract_strided_slice %431 {offsets = [0, 0], sizes = [2, 64], strides = [1, 1]} : vector<2x96xf32> to vector<2x64xf32>
    %434 = arith.addf %432, %433 : vector<2x64xf32>
    %435 = arith.negf %434 : vector<2x64xf32>
    %436 = math.exp %435 : vector<2x64xf32>
    %cst_118 = arith.constant 1.000000e+00 : f32
    %437 = vector.broadcast %cst_118 : f32 to vector<2x64xf32>
    %438 = arith.addf %437, %436 : vector<2x64xf32>
    %439 = arith.divf %437, %438 : vector<2x64xf32>
    %440 = vector.extract_strided_slice %439 {offsets = [0, 0], sizes = [2, 32], strides = [1, 1]} : vector<2x64xf32> to vector<2x32xf32>
    %441 = vector.extract_strided_slice %439 {offsets = [0, 32], sizes = [2, 32], strides = [1, 1]} : vector<2x64xf32> to vector<2x32xf32>
    %442 = vector.extract_strided_slice %428 {offsets = [0, 64], sizes = [2, 32], strides = [1, 1]} : vector<2x96xf32> to vector<2x32xf32>
    %443 = vector.extract_strided_slice %431 {offsets = [0, 64], sizes = [2, 32], strides = [1, 1]} : vector<2x96xf32> to vector<2x32xf32>
    %444 = arith.mulf %440, %443 : vector<2x32xf32>
    %445 = arith.addf %442, %444 : vector<2x32xf32>
    %446 = math.tanh %445 : vector<2x32xf32>
    %cst_119 = arith.constant 1.000000e+00 : f32
    %447 = vector.broadcast %cst_119 : f32 to vector<2x32xf32>
    %448 = arith.subf %447, %441 : vector<2x32xf32>
    %449 = arith.mulf %448, %446 : vector<2x32xf32>
    %450 = arith.mulf %441, %401 : vector<2x32xf32>
    %451 = arith.addf %449, %450 : vector<2x32xf32>
    %cst_120 = arith.constant dense<0.000000e+00> : vector<2x96xf32>
    %452 = tpu.matmul %451, %72, %cst_120 {dimension_numbers = #tpu.dot_dimension_numbers<[1], [0], [0], [1], [0, 0, 1, 1], [], []>} : vector<2x32xf32>, vector<32x96xf32>, vector<2x96xf32> -> vector<2x96xf32>
    %453 = vector.broadcast %73 : vector<1x96xf32> to vector<2x96xf32>
    %454 = arith.addf %452, %453 : vector<2x96xf32>
    %cst_121 = arith.constant dense<0.000000e+00> : vector<2x96xf32>
    %455 = tpu.matmul %427, %74, %cst_121 {dimension_numbers = #tpu.dot_dimension_numbers<[1], [0], [0], [1], [0, 0, 1, 1], [], []>} : vector<2x32xf32>, vector<32x96xf32>, vector<2x96xf32> -> vector<2x96xf32>
    %456 = vector.broadcast %75 : vector<1x96xf32> to vector<2x96xf32>
    %457 = arith.addf %455, %456 : vector<2x96xf32>
    %458 = vector.extract_strided_slice %454 {offsets = [0, 0], sizes = [2, 64], strides = [1, 1]} : vector<2x96xf32> to vector<2x64xf32>
    %459 = vector.extract_strided_slice %457 {offsets = [0, 0], sizes = [2, 64], strides = [1, 1]} : vector<2x96xf32> to vector<2x64xf32>
    %460 = arith.addf %458, %459 : vector<2x64xf32>
    %461 = arith.negf %460 : vector<2x64xf32>
    %462 = math.exp %461 : vector<2x64xf32>
    %cst_122 = arith.constant 1.000000e+00 : f32
    %463 = vector.broadcast %cst_122 : f32 to vector<2x64xf32>
    %464 = arith.addf %463, %462 : vector<2x64xf32>
    %465 = arith.divf %463, %464 : vector<2x64xf32>
    %466 = vector.extract_strided_slice %465 {offsets = [0, 0], sizes = [2, 32], strides = [1, 1]} : vector<2x64xf32> to vector<2x32xf32>
    %467 = vector.extract_strided_slice %465 {offsets = [0, 32], sizes = [2, 32], strides = [1, 1]} : vector<2x64xf32> to vector<2x32xf32>
    %468 = vector.extract_strided_slice %454 {offsets = [0, 64], sizes = [2, 32], strides = [1, 1]} : vector<2x96xf32> to vector<2x32xf32>
    %469 = vector.extract_strided_slice %457 {offsets = [0, 64], sizes = [2, 32], strides = [1, 1]} : vector<2x96xf32> to vector<2x32xf32>
    %470 = arith.mulf %466, %469 : vector<2x32xf32>
    %471 = arith.addf %468, %470 : vector<2x32xf32>
    %472 = math.tanh %471 : vector<2x32xf32>
    %cst_123 = arith.constant 1.000000e+00 : f32
    %473 = vector.broadcast %cst_123 : f32 to vector<2x32xf32>
    %474 = arith.subf %473, %467 : vector<2x32xf32>
    %475 = arith.mulf %474, %472 : vector<2x32xf32>
    %476 = arith.mulf %467, %427 : vector<2x32xf32>
    %477 = arith.addf %475, %476 : vector<2x32xf32>
    %c0_124 = arith.constant 0 : index
    %c0_125 = arith.constant 0 : index
    %478 = vector.load %arg10[%c0_124, %c0_125] : memref<1x32xf32, #tpu.memory_space<vmem>>, vector<1x32xf32>
    %479 = vector.broadcast %478 : vector<1x32xf32> to vector<2x32xf32>
    %480 = arith.mulf %477, %479 : vector<2x32xf32>
    %cst_126 = arith.constant dense<0.000000e+00> : vector<2xf32>
    %481 = vector.multi_reduction <add>, %480, %cst_126 [1] : vector<2x32xf32> to vector<2xf32>
    %482 = vector.shape_cast %481 : vector<2xf32> to vector<2x1xf32>
    %c0_127 = arith.constant 0 : index
    %c0_128 = arith.constant 0 : index
    %483 = vector.load %arg11[%c0_127, %c0_128] : memref<1x1xf32, #tpu.memory_space<vmem>>, vector<1x1xf32>
    %484 = vector.broadcast %483 : vector<1x1xf32> to vector<2x1xf32>
    %485 = arith.addf %482, %484 : vector<2x1xf32>
    %c0_129 = arith.constant 0 : index
    %c0_130 = arith.constant 0 : index
    %486 = vector.load %arg12[%c0_129, %c0_130] : memref<2x1xf32, #tpu.memory_space<vmem>>, vector<2x1xf32>
    tpu.vector_store %arg12[%c0_129, %c0_130], %485 {strides = array<i32>} : memref<2x1xf32, #tpu.memory_space<vmem>>, vector<2x1xf32>,
    return
  }
}

</mosaic_0001>

<bundles_post_ra>
// kernel: tpu_custom_call.1
= control target key start
LH: loop header
LB: loop body
LE: loop exit
PB: predicated region body
PF: predicated region fallthrough
CT: control target
= control target key end

     0   :  { %s3829_s0 = inlined_call_operand.vmem [shape: s32[16], index: 0, kind: input, shape index: {}]   ;;  %s3830_s1 = inlined_call_operand.vmem [shape: f32[128,32], index: 1, kind: input, shape index: {}]   ;;  %s3831_s2 = inlined_call_operand.vmem [shape: f32[32,96], index: 2, kind: input, shape index: {}]   ;;  %s3832_s3 = inlined_call_operand.vmem [shape: f32[32,96], index: 3, kind: input, shape index: {}]   ;;  %s3833_s4 = inlined_call_operand.vmem [shape: f32[1,96], index: 4, kind: input, shape index: {}]   ;;  %s3834_s5 = inlined_call_operand.vmem [shape: f32[1,96], index: 5, kind: input, shape index: {}]   ;;  %s3835_s6 = inlined_call_operand.vmem [shape: f32[32,96], index: 6, kind: input, shape index: {}]   ;;  %s3836_s7 = inlined_call_operand.vmem [shape: f32[32,96], index: 7, kind: input, shape index: {}]   ;;  %s3837_s8 = inlined_call_operand.vmem [shape: f32[1,96], index: 8, kind: input, shape index: {}]   ;;  %s3838_s9 = inlined_call_operand.vmem [shape: f32[1,96], index: 9, kind: input, shape index: {}]   ;;  %s3839_s10 = inlined_call_operand.vmem [shape: f32[1,32], index: 10, kind: input, shape index: {}]   ;;  %s3840_s11 = inlined_call_operand.<no memory space> [shape: f32[1,1], index: 11, kind: input, shape index: {}]   ;;  %s3841_s12 = inlined_call_operand.vmem [shape: f32[2,1], index: 12, kind: output, shape index: {}]  }
   0x1   :  { %v17_v0 = vstv %s3840_s11 }
   0x2   :  { %18 = vst [vmem:[#allocation3] sm:$0x1] %v17_v0 }
   0x3   :  { %19 = vsyncpa [#allocation5], 0  ;;  %s26_s25 = sshll.u32 %s3829_s0, 4  ;;  %s27_s25 = int_to_ptr.vmem [resolvable:$true] %s26_s25 }
   0x4   :  { %s3223_s26 = scalar_lea.vmem %s27_s25, 16  ;;  %p3228_p1 = scmp.lt.s32.totalorder %s27_s25, %s27_s25 }
   0x5   :  { %p3224_p0 = scmp.ne.s32.totalorder %s27_s25, %s3223_s26  ;;  %p3229_p2 = scmp.lt.s32.totalorder %s3223_s26, %s3223_s26 }
   0x7   :  { %p3230_p3 = por %p3229_p2, %p3228_p1 }
   0x9   :  { %p3231_p4 = pnand %p3230_p3, %p3224_p0 }
   0xb   :  { %3234 = shalt.err (!%p3231_p4)
}
   0xc   :  { %s3237_s27 = smov [#allocation4]  }
   0xd   :  { %29 = dma.vmem_to_smem %s27_s25, 16, %s3237_s27, [#allocation5]  }
   0xe   :  { %3235 = dma.done.wait [#allocation5], 16  }
   0xf   :  { %3236 = vsyncadd [#allocation5], 4294967280 }
  0x10   :  { %55 = sfence }
  0x11   :  { %v216_v1 = vld [vmem:[%s3832_s3] sm:$0xff]  ;;  %v217_v2 = vld [vmem:[%s3832_s3 + $0x8] sm:$0xff]  ;;  %v218_v3 = vld [vmem:[%s3832_s3 + $0x10] sm:$0xff]  ;;  %v3238_v4 = vmov 0.0|0.0   ;;  %vm3239_vm0 = vmmov 0   ;;  %v3240_v9 = vmov 0.0  }
  0x12   :  { %2973 = vmatprep.subr.bf16.mxu1 %v3238_v4  ;;  %v3325_v5 = vpack.c.bf16 %v217_v2, %v216_v1  ;;  %v219_v6 = vld [vmem:[%s3832_s3 + $0x18] sm:$0xff]  ;;  %v123_v7 = vld [vmem:[%s3831_s2] sm:$0xff]  ;;  %v124_v8 = vld [vmem:[%s3831_s2 + $0x8] sm:$0xff]  ;;  %2709 = vmatprep.mubr.msk.f32.mxu1 %vm3239_vm0, %v3240_v9  ;;  %s56_s20 = sld [smem:[#allocation4]]  ;;  %s2503_s24 = sld [smem:[#allocation4 + $0x1]]  ;;  %vm59_vm1 = vcmask 253952  }
  0x13   :  { %v2965_v10 = vpack.c.bf16 %v124_v8, %v123_v7  ;;  %v125_v11 = vld [vmem:[%s3831_s2 + $0x10] sm:$0xff]  ;;  %v126_v12 = vld [vmem:[%s3831_s2 + $0x18] sm:$0xff]  ;;  %s2504_s25 = sld [smem:[#allocation4 + $0x2]]  ;;  %v3345_v13 = vpack.c.bf16 %v219_v6, %v218_v3  ;;  %s3347_s26 = sld [smem:[#allocation4 + $0x3]]  ;;  %vm134_vm2 = vcmask 261120   ;;  %v226_v51 = vld [vmem:[%s3836_s7] sm:$0xff] }
  0x14   :  { %2975 = vmatpush3.bf16.msra.mxu1 %v3325_v5  ;;  %v2969_v14 = vpack.c.bf16 %v126_v12, %v125_v11  ;;  %s3349_s27 = sld [smem:[#allocation4 + $0x4]]  ;;  %s3352_s11 = sld [smem:[#allocation4 + $0x5]]  ;;  %v3452_v33 = vld [vmem:[%s3834_s5] ss:$0 sm:$0xff]  ;;  %v227_v52 = vld [vmem:[%s3836_s7 + $0x8] sm:$0xff]  ;;  %v228_v53 = vld [vmem:[%s3836_s7 + $0x10] sm:$0xff] }
  0x15   :  { %2976 = vmatprep.subr.bf16.mxu1 %v3238_v4  ;;  %2966 = vmatprep.subr.bf16.mxu0 %v2965_v10  ;;  %s3354_s28 = sld [smem:[#allocation4 + $0x6]]  ;;  %s3356_s2 = sld [smem:[#allocation4 + $0x7]]  ;;  %v2518_v38 = vld [vmem:[%s3833_s4] ss:$0 sm:$0xff]  ;;  %v3475_v54 = vpack.c.bf16 %v227_v52, %v226_v51  ;;  %v229_v55 = vld [vmem:[%s3836_s7 + $0x18] sm:$0xff]  ;;  %v222_v57 = vld [vmem:[%s3835_s6 + $0x8] sm:$0xff] }
  0x16   :  { %2968 = vmatpush3.bf16.msra.mxu0 %v2965_v10  ;;  %s3358_s29 = sld [smem:[#allocation4 + $0x8]]  ;;  %s3360_s30 = sld [smem:[#allocation4 + $0x9]]  ;;  %v221_v56 = vld [vmem:[%s3835_s6] sm:$0xff]  ;;  %v223_v59 = vld [vmem:[%s3835_s6 + $0x10] sm:$0xff]  ;;  %v224_v60 = vld [vmem:[%s3835_s6 + $0x18] sm:$0xff]  ;;  %v3495_v61 = vpack.c.bf16 %v229_v55, %v228_v53  ;;  %vm2468_vm3 = vcmask 254976  }
  0x17   :  { %2970 = vmatprep.subr.bf16.mxu0 %v2969_v14  ;;  %s3362_s0 = sld [smem:[#allocation4 + $0xa]]  ;;  %s3368_s16 = sld [smem:[#allocation4 + $0xb]]  ;;  %v3486_v58 = vpack.c.bf16 %v222_v57, %v221_v56  ;;  %v3499_v62 = vpack.c.bf16 %v224_v60, %v223_v59  ;;  %v3521_v7 = vld [vmem:[%s3838_s9] ss:$0 sm:$0xff]  ;;  %vm2480_vm4 = vcmask 1024  }
  0x18   :  { %2978 = vmatpush3.bf16.msra.mxu1 %v3345_v13  ;;  %s57_s15 = scalar_lea.vmem %s3830_s1, %s56_s20  ;;  %s62_s19 = scalar_lea.vmem %s3830_s1, %s2503_s24 }
  0x19   :  { %v58_v15 = vld [vmem:[%s57_s15] sm:$0x1]  ;;  %s66_s3 = scalar_lea.vmem %s3830_s1, %s2504_s25  ;;  %2985 = vmatprep.subr.bf16.mxu1 %v3238_v4  ;;  %s70_s13 = scalar_lea.vmem %s3830_s1, %s3347_s26 }
  0x1a   :  { %2972 = vmatpush3.bf16.msra.mxu0 %v2969_v14  ;;  %60 = vst.msk [vmem:[#allocation2] sm:$0x1] %vm59_vm1, %v58_v15  ;;  %v63_v16 = vld [vmem:[%s62_s19] sm:$0x1]  ;;  %s74_s24 = scalar_lea.vmem %s3830_s1, %s3349_s27  ;;  %s78_s18 = scalar_lea.vmem %s3830_s1, %s3352_s11 }
  0x1b   :  { %v67_v17 = vld [vmem:[%s66_s3] sm:$0x1]  ;;  %2710 = vmatmul.mubr.f32.vlgmr.msra.gmra.mrb[0].mxu1 %v3240_v9  ;;  %64 = vst.msk [vmem:[#allocation2 + $0x1] sm:$0x1] %vm59_vm1, %v63_v16  ;;  %s82_s21 = scalar_lea.vmem %s3830_s1, %s3354_s28  ;;  %2979 = vmatprep.subr.bf16.mxu0 %v3238_v4  ;;  %s86_s3 = scalar_lea.vmem %s3830_s1, %s3356_s2 }
  0x1c   :  { %68 = vst.msk [vmem:[#allocation2 + $0x2] sm:$0x1] %vm59_vm1, %v67_v17  ;;  %v71_v18 = vld [vmem:[%s70_s13] sm:$0x1]  ;;  %s90_s11 = scalar_lea.vmem %s3830_s1, %s3358_s29  ;;  %2731 = vmatprep.mubr.msk.f32.mxu1 %vm3239_vm0, %v3240_v9  ;;  %s94_s14 = scalar_lea.vmem %s3830_s1, %s3360_s30  ;;  %2987 = vmatpush3.bf16.msra.mxu1 %v3475_v54 }
  0x1d   :  { %v75_v19 = vld [vmem:[%s74_s24] sm:$0x1]  ;;  %72 = vst.msk [vmem:[#allocation2 + $0x3] sm:$0x1] %vm59_vm1, %v71_v18  ;;  %s98_s2 = scalar_lea.vmem %s3830_s1, %s3362_s0  ;;  %s102_s17 = scalar_lea.vmem %s3830_s1, %s3368_s16  ;;  %2988 = vmatprep.subr.bf16.mxu1 %v3238_v4 }
  0x1e   :  { %76 = vst.msk [vmem:[#allocation2 + $0x4] sm:$0x1] %vm59_vm1, %v75_v19  ;;  %v79_v20 = vld [vmem:[%s78_s18] sm:$0x1]  ;;  %s2514_s18 = sld [smem:[#allocation4 + $0xc]]  ;;  %s2515_s30 = sld [smem:[#allocation4 + $0xd]] }
  0x1f   :  { %v83_v21 = vld [vmem:[%s82_s21] sm:$0x1]  ;;  %80 = vst.msk [vmem:[#allocation2 + $0x5] sm:$0x1] %vm59_vm1, %v79_v20  ;;  %s2516_s19 = sld [smem:[#allocation4 + $0xe]]  ;;  %s2517_s0 = sld [smem:[#allocation4 + $0xf]] }
  0x20   :  { %84 = vst.msk [vmem:[#allocation2 + $0x6] sm:$0x1] %vm59_vm1, %v83_v21  ;;  %v87_v22 = vld [vmem:[%s86_s3] sm:$0x1]  ;;  %2990 = vmatpush3.bf16.msra.mxu1 %v3495_v61  ;;  %s3242_s6 = smov 96  }
  0x21   :  { %v91_v23 = vld [vmem:[%s90_s11] sm:$0x1]  ;;  %88 = vst.msk [vmem:[#allocation2 + $0x7] sm:$0x1] %vm59_vm1, %v87_v22  ;;  %2997 = vmatprep.subr.bf16.mxu1 %v3238_v4 }
  0x22   :  { %92 = vst.msk [vmem:[#allocation2 + $0x8] sm:$0x1] %vm59_vm1, %v91_v23  ;;  %v95_v24 = vld [vmem:[%s94_s14] sm:$0x1] }
  0x23   :  { %v99_v25 = vld [vmem:[%s98_s2] sm:$0x1]  ;;  %96 = vst.msk [vmem:[#allocation2 + $0x9] sm:$0x1] %vm59_vm1, %v95_v24  ;;  %2732 = vmatmul.mubr.f32.vlgmr.msra.gmra.mrb[2].mxu1 %v3240_v9 }
  0x24   :  { %100 = vst.msk [vmem:[#allocation2 + $0xa] sm:$0x1] %vm59_vm1, %v99_v25  ;;  %v103_v26 = vld [vmem:[%s102_s17] sm:$0x1]  ;;  %s106_s27 = scalar_lea.vmem %s3830_s1, %s2514_s18  ;;  %s110_s3 = scalar_lea.vmem %s3830_s1, %s2515_s30  ;;  %2999 = vmatpush3.bf16.msra.mxu1 %v3486_v58  ;;  %2753 = vmatprep.mubr.msk.f32.mxu1 %vm3239_vm0, %v3240_v9 }
  0x25   :  { %104 = vst.msk [vmem:[#allocation2 + $0xb] sm:$0x1] %vm59_vm1, %v103_v26  ;;  %v107_v28 = vld [vmem:[%s106_s27] sm:$0x1]  ;;  %s114_s11 = scalar_lea.vmem %s3830_s1, %s2516_s19  ;;  %s118_s14 = scalar_lea.vmem %s3830_s1, %s2517_s0  ;;  %3000 = vmatprep.subr.bf16.mxu1 %v3238_v4 }
  0x26   :  { %108 = vst.msk [vmem:[#allocation2 + $0xc] sm:$0x1] %vm59_vm1, %v107_v28  ;;  %v111_v29 = vld [vmem:[%s110_s3] sm:$0x1]  ;;  %s3241_s1 = smov 64   ;;  %s3243_s17 = smov 32  }
  0x27   :  { %v115_v30 = vld [vmem:[%s114_s11] sm:$0x1]  ;;  %112 = vst.msk [vmem:[#allocation2 + $0xd] sm:$0x1] %vm59_vm1, %v111_v29 }
  0x28   :  { %v121_v27 = vld [vmem:[#allocation2] sm:$0xff]  ;;  %116 = vst.msk [vmem:[#allocation2 + $0xe] sm:$0x1] %vm59_vm1, %v115_v30  ;;  %3002 = vmatpush3.bf16.msra.mxu1 %v3499_v62 }
  0x29   :  { %2698 = vmatprep.mubr.msk.f32.mxu0 %vm134_vm2, %v121_v27  ;;  %v119_v31 = vld [vmem:[%s118_s14] sm:$0x1]  ;;  %3009 = vmatprep.subr.bf16.mxu1 %v3238_v4 }
  0x2a   :  { %120 = vst.msk [vmem:[#allocation2 + $0xf] sm:$0x1] %vm59_vm1, %v119_v31  ;;  %v3542_v14 = vld [vmem:[%s3837_s8] ss:$0 sm:$0xff] }
  0x31   :  { %v122_v32 = vld [vmem:[#allocation2 + $0x8] sm:$0xff] }
  0x32   :  { %2699 = vmatmul.mubr.msk.f32.vlgmr.msra.gmra.mrb[0].mxu0 %vm134_vm2, %v122_v32 }
  0x33   :  { %2720 = vmatprep.mubr.msk.f32.mxu0 %vm3239_vm0, %v3240_v9  ;;  %2981 = vmatpush3.bf16.msra.mxu0 %v3486_v58 }
  0x34   :  { %2982 = vmatprep.subr.bf16.mxu0 %v3238_v4 }
  0x37   :  { %2984 = vmatpush3.bf16.msra.mxu0 %v3499_v62 }
  0x38   :  { %2991 = vmatprep.subr.bf16.mxu0 %v3238_v4 }
  0xee   :  { %v306_v34 = vpop.f32.mrb[0].mxu1 }
  0xef   :  { %v307_v35 = vadd.f32 %v3452_v33, %v306_v34  ;;  %v2711_v36 = vpop.f32.mrb[1].mxu1 }
  0xf1   :  { %318 = vrot.lane.b32.xlu0 %v307_v35, %s3241_s1 }
  0xf6   :  { %v489_v8 = vpop.f32.mrb[2].mxu1 }
  0xf7   :  { %v490_v10 = vadd.f32 %v3521_v7, %v489_v8  ;;  %v2733_v11 = vpop.f32.mrb[3].mxu1 }
 0x105   :  { %v2700_v37 = vpop.f32.mrb[0].mxu0 }
 0x106   :  { %v3459_v39 = vadd.f32 %v2700_v37, %v2518_v38  ;;  %v207_v40 = vpop.f32.mrb[1].mxu0 }
 0x107   :  { %v3461_v41 = vadd.f32 %v2518_v38, %v207_v40 }
 0x109   :  { %v310_v42 = vadd.f32 %v307_v35, %v3461_v41 }
 0x10b   :  { %v2522_v43 = vmul.f32 -1.442695, %v310_v42 }
 0x10d   :  { %3124 = vpow2.f32 %v2522_v43 }
 0x117   :  { %v3125_v44 = vpop.eup %3124 }
 0x118   :  { %v314_v45 = vadd.f32 1.0, %v3125_v44 }
 0x11a   :  { %3126 = vrcp.f32 %v314_v45 }
 0x124   :  { %v3127_v46 = vpop.eup %3126 }
 0x125   :  { %v328_v0 = vsub.f32 1.0, %v3127_v46  ;;  %v334_v2 = vmul.f32 0.0, %v3127_v46 }
 0x163   :  { %v319_v47 = vpop.permute.xlu0 %318 }
 0x164   :  { %v321_v48 = vmul.f32 %v3127_v46, %v319_v47 }
 0x166   :  { %323 = vrot.lane.b32.xlu0 %v321_v48, %s3241_s1 }
 0x1d8   :  { %v324_v49 = vpop.permute.xlu0 %323 }
 0x1d9   :  { %v326_v50 = vadd.f32 %v324_v49, %v3461_v41 }
 0x1db   :  { %3128 = vtanh.f32 %v326_v50 }
 0x1e5   :  { %v3129_v63 = vpop.eup %3128 }
 0x1e6   :  { %330 = vrot.lane.b32.xlu1 %v3129_v63, %s3242_s6 }
 0x258   :  { %v331_v1 = vpop.permute.xlu1 %330 }
 0x259   :  { %v333_v3 = vmul.f32 %v331_v1, %v328_v0 }
 0x25b   :  { %v3514_v6 = vadd.f32 %v334_v2, %v333_v3 }
 0x25d   :  { %343 = vrot.lane.b32.xlu1 %v3514_v6, %s3242_s6  ;;  %v615_v50 = vrot.slane %v3514_v6, 6 }
 0x261   :  { %501 = vrot.lane.b32.xlu1 %v490_v10, %s3241_s1 }
 0x2cf   :  { %v344_v12 = vpop.permute.xlu1 %343 }
 0x2d0   :  { %2721 = vmatmul.mubr.msk.f32.vlgmr.msra.gmra.mrb[2].mxu0 %vm134_vm2, %v344_v12 }
 0x2d1   :  { %2993 = vmatpush3.bf16.msra.mxu0 %v3325_v5  ;;  %2742 = vmatprep.mubr.msk.f32.mxu0 %vm3239_vm0, %v3240_v9 }
 0x2d2   :  { %2994 = vmatprep.subr.bf16.mxu0 %v3238_v4 }
 0x2d3   :  { %v502_v26 = vpop.permute.xlu1 %501 }
 0x2d5   :  { %2996 = vmatpush3.bf16.msra.mxu0 %v3345_v13 }
 0x2d6   :  { %3003 = vmatprep.subr.bf16.mxu0 %v3238_v4 }
 0x2d8   :  { %2743 = vmatmul.mubr.msk.f32.vlgmr.msra.gmra.mrb[4].mxu0 %vm134_vm2, %v344_v12 }
 0x2d9   :  { %3005 = vmatpush3.bf16.msra.mxu0 %v3475_v54  ;;  %2764 = vmatprep.mubr.msk.f32.mxu0 %vm3239_vm0, %v3240_v9 }
 0x2da   :  { %3006 = vmatprep.subr.bf16.mxu0 %v3238_v4 }
 0x2dd   :  { %3008 = vmatpush3.bf16.msra.mxu0 %v3495_v61 }
 0x2de   :  { %3015 = vmatprep.subr.bf16.mxu0 %v3238_v4 }
 0x3a3   :  { %v413_v15 = vpop.f32.mrb[2].mxu0 }
 0x3a4   :  { %v414_v16 = vadd.f32 %v3542_v14, %v413_v15  ;;  %v2722_v17 = vpop.f32.mrb[3].mxu0 }
 0x3a6   :  { %v493_v18 = vadd.f32 %v490_v10, %v414_v16 }
 0x3a8   :  { %v2526_v19 = vmul.f32 -1.442695, %v493_v18 }
 0x3aa   :  { %3130 = vpow2.f32 %v2526_v19 }
 0x3ab   :  { %v585_v20 = vpop.f32.mrb[4].mxu0 }
 0x3ac   :  { %v586_v21 = vadd.f32 %v3452_v33, %v585_v20  ;;  %v2744_v22 = vpop.f32.mrb[5].mxu0 }
 0x3ae   :  { %v590_v23 = vrot.slane %v586_v21, 6 }
 0x3b0   :  { %599 = vrot.lane.b32.xlu0 %v590_v23, %s3241_s1  ;;  %v592_v29 = vadd.f32 %v590_v23, %v3461_v41 }
 0x3b2   :  { %v2528_v30 = vmul.f32 -1.442695, %v592_v29 }
 0x3b4   :  { %v3131_v24 = vpop.eup %3130 }
 0x3b5   :  { %v497_v25 = vadd.f32 1.0, %v3131_v24 }
 0x3b7   :  { %3132 = vrcp.f32 %v497_v25 }
 0x3b8   :  { %3134 = vpow2.f32 %v2528_v30 }
 0x3c1   :  { %v3133_v27 = vpop.eup %3132 }
 0x3c2   :  { %v504_v28 = vmul.f32 %v3133_v27, %v502_v26  ;;  %v3135_v31 = vpop.eup %3134  ;;  %v511_v45 = vsub.f32 1.0, %v3133_v27  ;;  %v517_v47 = vmul.f32 0.0, %v3133_v27 }
 0x3c3   :  { %v596_v32 = vadd.f32 1.0, %v3135_v31 }
 0x3c4   :  { %506 = vrot.lane.b32.xlu1 %v504_v28, %s3241_s1 }
 0x3c5   :  { %3136 = vrcp.f32 %v596_v32 }
 0x3cf   :  { %v3137_v34 = vpop.eup %3136 }
 0x3d0   :  { %v609_v51 = vsub.f32 1.0, %v3137_v34  ;;  %v617_v55 = vmul.f32 %v3137_v34, %v615_v50 }
 0x422   :  { %v600_v35 = vpop.permute.xlu0 %599 }
 0x423   :  { %v602_v36 = vmul.f32 %v3137_v34, %v600_v35 }
 0x425   :  { %604 = vrot.lane.b32.xlu0 %v602_v36, %s3241_s1 }
 0x436   :  { %v507_v37 = vpop.permute.xlu1 %506 }
 0x437   :  { %v509_v38 = vadd.f32 %v507_v37, %v414_v16 }
 0x439   :  { %3138 = vtanh.f32 %v509_v38 }
 0x443   :  { %v3139_v40 = vpop.eup %3138 }
 0x444   :  { %513 = vrot.lane.b32.xlu1 %v3139_v40, %s3242_s6 }
 0x497   :  { %v605_v42 = vpop.permute.xlu0 %604 }
 0x498   :  { %v607_v43 = vadd.f32 %v605_v42, %v3461_v41 }
 0x49a   :  { %3140 = vtanh.f32 %v607_v43 }
 0x4a4   :  { %v3141_v44 = vpop.eup %3140 }
 0x4a5   :  { %611 = vrot.lane.b32.xlu0 %v3141_v44, %s3242_s6 }
 0x4b6   :  { %v514_v46 = vpop.permute.xlu1 %513 }
 0x4b7   :  { %v516_v48 = vmul.f32 %v514_v46, %v511_v45 }
 0x4b9   :  { %v3553_v49 = vadd.f32 %v517_v47, %v516_v48 }
 0x4bb   :  { %696 = vrot.lane.b32.xlu1 %v3553_v49, %s3242_s6 }
 0x517   :  { %v612_v52 = vpop.permute.xlu0 %611 }
 0x518   :  { %v614_v53 = vmul.f32 %v612_v52, %v609_v51 }
 0x51a   :  { %v3558_v56 = vadd.f32 %v617_v55, %v614_v53 }
 0x51c   :  { %v620_v57 = vrot.slane %v3558_v56, 2  ;;  %v892_v43 = vrot.slane %v3558_v56, 6 }
 0x51e   :  { %621 = vrot.lane.b32.xlu0 %v620_v57, %s3242_s6 }
 0x52d   :  { %v697_v59 = vpop.permute.xlu1 %696 }
 0x52e   :  { %2765 = vmatmul.mubr.msk.f32.vlgmr.msra.gmra.mrb[6].mxu0 %vm134_vm2, %v697_v59 }
 0x52f   :  { %3017 = vmatpush3.bf16.msra.mxu0 %v3486_v58  ;;  %2786 = vmatprep.mubr.msk.f32.mxu0 %vm3239_vm0, %v3240_v9 }
 0x530   :  { %3018 = vmatprep.subr.bf16.mxu0 %v3238_v4 }
 0x533   :  { %3020 = vmatpush3.bf16.msra.mxu0 %v3499_v62 }
 0x534   :  { %3027 = vmatprep.subr.bf16.mxu0 %v3238_v4 }
 0x590   :  { %v622_v60 = vpop.permute.xlu0 %621 }
 0x591   :  { %2754 = vmatmul.mubr.msk.f32.vlgmr.msra.gmra.mrb[4].mxu1 %vm134_vm2, %v622_v60 }
 0x592   :  { %3011 = vmatpush3.bf16.msra.mxu1 %v3325_v5  ;;  %2775 = vmatprep.mubr.msk.f32.mxu1 %vm3239_vm0, %v3240_v9 }
 0x593   :  { %3012 = vmatprep.subr.bf16.mxu1 %v3238_v4 }
 0x596   :  { %3014 = vmatpush3.bf16.msra.mxu1 %v3345_v13 }
 0x597   :  { %3021 = vmatprep.subr.bf16.mxu1 %v3238_v4 }
 0x599   :  { %2776 = vmatmul.mubr.msk.f32.vlgmr.msra.gmra.mrb[6].mxu1 %vm134_vm2, %v622_v60 }
 0x59a   :  { %3023 = vmatpush3.bf16.msra.mxu1 %v3475_v54  ;;  %2797 = vmatprep.mubr.msk.f32.mxu1 %vm3239_vm0, %v3240_v9 }
 0x59b   :  { %3024 = vmatprep.subr.bf16.mxu1 %v3238_v4 }
 0x59e   :  { %3026 = vmatpush3.bf16.msra.mxu1 %v3495_v61 }
 0x59f   :  { %3033 = vmatprep.subr.bf16.mxu1 %v3238_v4 }
 0x601   :  { %v766_v63 = vpop.f32.mrb[6].mxu0 }
 0x602   :  { %v767_v0 = vadd.f32 %v3521_v7, %v766_v63  ;;  %v2766_v1 = vpop.f32.mrb[7].mxu0 }
 0x604   :  { %778 = vrot.lane.b32.xlu1 %v767_v0, %s3241_s1 }
 0x664   :  { %v691_v2 = vpop.f32.mrb[4].mxu1 }
 0x665   :  { %v692_v3 = vadd.f32 %v3542_v14, %v691_v2  ;;  %v2755_v6 = vpop.f32.mrb[5].mxu1 }
 0x667   :  { %v770_v8 = vadd.f32 %v767_v0, %v692_v3 }
 0x669   :  { %v2531_v10 = vmul.f32 -1.442695, %v770_v8 }
 0x66b   :  { %3142 = vpow2.f32 %v2531_v10 }
 0x66c   :  { %v862_v11 = vpop.f32.mrb[6].mxu1 }
 0x66d   :  { %v863_v12 = vadd.f32 %v3452_v33, %v862_v11  ;;  %v2777_v15 = vpop.f32.mrb[7].mxu1 }
 0x66f   :  { %v867_v16 = vrot.slane %v863_v12, 4 }
 0x671   :  { %876 = vrot.lane.b32.xlu0 %v867_v16, %s3241_s1  ;;  %v869_v22 = vadd.f32 %v867_v16, %v3461_v41 }
 0x673   :  { %v2533_v23 = vmul.f32 -1.442695, %v869_v22 }
 0x675   :  { %v3143_v17 = vpop.eup %3142 }
 0x676   :  { %v774_v18 = vadd.f32 1.0, %v3143_v17  ;;  %v779_v20 = vpop.permute.xlu1 %778 }
 0x678   :  { %3144 = vrcp.f32 %v774_v18 }
 0x679   :  { %3146 = vpow2.f32 %v2533_v23 }
 0x682   :  { %v3145_v19 = vpop.eup %3144 }
 0x683   :  { %v781_v21 = vmul.f32 %v3145_v19, %v779_v20  ;;  %v3147_v24 = vpop.eup %3146  ;;  %v788_v36 = vsub.f32 1.0, %v3145_v19  ;;  %v794_v38 = vmul.f32 %v3145_v19, %v3553_v49 }
 0x684   :  { %v873_v25 = vadd.f32 1.0, %v3147_v24 }
 0x685   :  { %783 = vrot.lane.b32.xlu1 %v781_v21, %s3241_s1 }
 0x686   :  { %3148 = vrcp.f32 %v873_v25 }
 0x690   :  { %v3149_v26 = vpop.eup %3148 }
 0x691   :  { %v886_v44 = vsub.f32 1.0, %v3149_v26  ;;  %v894_v46 = vmul.f32 %v3149_v26, %v892_v43 }
 0x6e3   :  { %v877_v27 = vpop.permute.xlu0 %876 }
 0x6e4   :  { %v879_v28 = vmul.f32 %v3149_v26, %v877_v27 }
 0x6e6   :  { %881 = vrot.lane.b32.xlu0 %v879_v28, %s3241_s1 }
 0x6f7   :  { %v784_v29 = vpop.permute.xlu1 %783 }
 0x6f8   :  { %v786_v30 = vadd.f32 %v784_v29, %v692_v3 }
 0x6fa   :  { %3150 = vtanh.f32 %v786_v30 }
 0x704   :  { %v3151_v31 = vpop.eup %3150 }
 0x705   :  { %790 = vrot.lane.b32.xlu1 %v3151_v31, %s3242_s6 }
 0x758   :  { %v882_v32 = vpop.permute.xlu0 %881 }
 0x759   :  { %v884_v34 = vadd.f32 %v882_v32, %v3461_v41 }
 0x75b   :  { %3152 = vtanh.f32 %v884_v34 }
 0x765   :  { %v3153_v35 = vpop.eup %3152 }
 0x766   :  { %888 = vrot.lane.b32.xlu0 %v3153_v35, %s3242_s6 }
 0x777   :  { %v791_v37 = vpop.permute.xlu1 %790 }
 0x778   :  { %v793_v40 = vmul.f32 %v791_v37, %v788_v36 }
 0x77a   :  { %v3595_v42 = vadd.f32 %v794_v38, %v793_v40 }
 0x77c   :  { %973 = vrot.lane.b32.xlu1 %v3595_v42, %s3242_s6 }
 0x7d8   :  { %v889_v45 = vpop.permute.xlu0 %888 }
 0x7d9   :  { %v891_v47 = vmul.f32 %v889_v45, %v886_v44 }
 0x7db   :  { %v3600_v48 = vadd.f32 %v894_v46, %v891_v47 }
 0x7dd   :  { %v897_v50 = vrot.slane %v3600_v48, 4  ;;  %v1169_v34 = vrot.slane %v3600_v48, 6 }
 0x7df   :  { %898 = vrot.lane.b32.xlu0 %v897_v50, %s3242_s6 }
 0x7ee   :  { %v974_v51 = vpop.permute.xlu1 %973 }
 0x7ef   :  { %2798 = vmatmul.mubr.msk.f32.vlgmr.msra.gmra.mrb[8].mxu1 %vm134_vm2, %v974_v51 }
 0x7f0   :  { %3035 = vmatpush3.bf16.msra.mxu1 %v3486_v58  ;;  %2819 = vmatprep.mubr.msk.f32.mxu1 %vm3239_vm0, %v3240_v9 }
 0x7f1   :  { %3036 = vmatprep.subr.bf16.mxu1 %v3238_v4 }
 0x7f4   :  { %3038 = vmatpush3.bf16.msra.mxu1 %v3499_v62 }
 0x7f5   :  { %3045 = vmatprep.subr.bf16.mxu1 %v3238_v4 }
 0x851   :  { %v899_v49 = vpop.permute.xlu0 %898 }
 0x852   :  { %2787 = vmatmul.mubr.msk.f32.vlgmr.msra.gmra.mrb[8].mxu0 %vm134_vm2, %v899_v49 }
 0x853   :  { %3029 = vmatpush3.bf16.msra.mxu0 %v3325_v5  ;;  %2808 = vmatprep.mubr.msk.f32.mxu0 %vm3239_vm0, %v3240_v9 }
 0x854   :  { %3030 = vmatprep.subr.bf16.mxu0 %v3238_v4 }
 0x857   :  { %3032 = vmatpush3.bf16.msra.mxu0 %v3345_v13 }
 0x858   :  { %3039 = vmatprep.subr.bf16.mxu0 %v3238_v4 }
 0x85a   :  { %2809 = vmatmul.mubr.msk.f32.vlgmr.msra.gmra.mrb[10].mxu0 %vm134_vm2, %v899_v49 }
 0x85b   :  { %3041 = vmatpush3.bf16.msra.mxu0 %v3475_v54  ;;  %2830 = vmatprep.mubr.msk.f32.mxu0 %vm3239_vm0, %v3240_v9 }
 0x85c   :  { %3042 = vmatprep.subr.bf16.mxu0 %v3238_v4 }
 0x85f   :  { %3044 = vmatpush3.bf16.msra.mxu0 %v3495_v61 }
 0x860   :  { %3051 = vmatprep.subr.bf16.mxu0 %v3238_v4 }
 0x8c2   :  { %v1043_v52 = vpop.f32.mrb[8].mxu1 }
 0x8c3   :  { %v1044_v53 = vadd.f32 %v3521_v7, %v1043_v52  ;;  %v2799_v55 = vpop.f32.mrb[9].mxu1 }
 0x8c5   :  { %1055 = vrot.lane.b32.xlu1 %v1044_v53, %s3241_s1 }
 0x925   :  { %v968_v56 = vpop.f32.mrb[8].mxu0 }
 0x926   :  { %v969_v57 = vadd.f32 %v3542_v14, %v968_v56  ;;  %v2788_v59 = vpop.f32.mrb[9].mxu0 }
 0x928   :  { %v1047_v60 = vadd.f32 %v1044_v53, %v969_v57 }
 0x92a   :  { %v2536_v63 = vmul.f32 -1.442695, %v1047_v60 }
 0x92c   :  { %3154 = vpow2.f32 %v2536_v63 }
 0x92d   :  { %v1139_v0 = vpop.f32.mrb[10].mxu0 }
 0x92e   :  { %v1140_v1 = vadd.f32 %v3452_v33, %v1139_v0  ;;  %v2810_v2 = vpop.f32.mrb[11].mxu0 }
 0x930   :  { %v1144_v3 = vrot.slane %v1140_v1, 2 }
 0x932   :  { %1153 = vrot.lane.b32.xlu0 %v1144_v3, %s3241_s1  ;;  %v1146_v15 = vadd.f32 %v1144_v3, %v3461_v41 }
 0x934   :  { %v2538_v16 = vmul.f32 -1.442695, %v1146_v15 }
 0x936   :  { %v3155_v6 = vpop.eup %3154 }
 0x937   :  { %v1051_v8 = vadd.f32 1.0, %v3155_v6  ;;  %v1056_v11 = vpop.permute.xlu1 %1055 }
 0x939   :  { %3156 = vrcp.f32 %v1051_v8 }
 0x93a   :  { %3158 = vpow2.f32 %v2538_v16 }
 0x943   :  { %v3157_v10 = vpop.eup %3156 }
 0x944   :  { %v1058_v12 = vmul.f32 %v3157_v10, %v1056_v11  ;;  %v3159_v17 = vpop.eup %3158  ;;  %v1065_v28 = vsub.f32 1.0, %v3157_v10  ;;  %v1071_v30 = vmul.f32 %v3157_v10, %v3595_v42 }
 0x945   :  { %v1150_v18 = vadd.f32 1.0, %v3159_v17 }
 0x946   :  { %1060 = vrot.lane.b32.xlu1 %v1058_v12, %s3241_s1 }
 0x947   :  { %3160 = vrcp.f32 %v1150_v18 }
 0x951   :  { %v3161_v19 = vpop.eup %3160 }
 0x952   :  { %v1163_v35 = vsub.f32 1.0, %v3161_v19  ;;  %v1171_v37 = vmul.f32 %v3161_v19, %v1169_v34 }
 0x9a4   :  { %v1154_v20 = vpop.permute.xlu0 %1153 }
 0x9a5   :  { %v1156_v21 = vmul.f32 %v3161_v19, %v1154_v20 }
 0x9a7   :  { %1158 = vrot.lane.b32.xlu0 %v1156_v21, %s3241_s1 }
 0x9b8   :  { %v1061_v22 = vpop.permute.xlu1 %1060 }
 0x9b9   :  { %v1063_v23 = vadd.f32 %v1061_v22, %v969_v57 }
 0x9bb   :  { %3162 = vtanh.f32 %v1063_v23 }
 0x9c5   :  { %v3163_v24 = vpop.eup %3162 }
 0x9c6   :  { %1067 = vrot.lane.b32.xlu1 %v3163_v24, %s3242_s6 }
 0xa19   :  { %v1159_v25 = vpop.permute.xlu0 %1158 }
 0xa1a   :  { %v1161_v26 = vadd.f32 %v1159_v25, %v3461_v41 }
 0xa1c   :  { %3164 = vtanh.f32 %v1161_v26 }
 0xa26   :  { %v3165_v27 = vpop.eup %3164 }
 0xa27   :  { %1165 = vrot.lane.b32.xlu0 %v3165_v27, %s3242_s6 }
 0xa38   :  { %v1068_v29 = vpop.permute.xlu1 %1067 }
 0xa39   :  { %v1070_v31 = vmul.f32 %v1068_v29, %v1065_v28 }
 0xa3b   :  { %v3637_v32 = vadd.f32 %v1071_v30, %v1070_v31 }
 0xa3d   :  { %1250 = vrot.lane.b32.xlu1 %v3637_v32, %s3242_s6 }
 0xa99   :  { %v1166_v36 = vpop.permute.xlu0 %1165 }
 0xa9a   :  { %v1168_v41 = vmul.f32 %v1166_v36, %v1163_v35 }
 0xa9c   :  { %v3642_v38 = vadd.f32 %v1171_v37, %v1168_v41 }
 0xa9e   :  { %v1174_v40 = vrot.slane %v3642_v38, 6 }
 0xaa0   :  { %1175 = vrot.lane.b32.xlu0 %v1174_v40, %s3242_s6 }
 0xaaf   :  { %v1251_v42 = vpop.permute.xlu1 %1250 }
 0xab0   :  { %2831 = vmatmul.mubr.msk.f32.vlgmr.msra.gmra.mrb[12].mxu0 %vm134_vm2, %v1251_v42 }
 0xab1   :  { %3053 = vmatpush3.bf16.msra.mxu0 %v3486_v58  ;;  %2852 = vmatprep.mubr.msk.f32.mxu0 %vm3239_vm0, %v3240_v9 }
 0xab2   :  { %3054 = vmatprep.subr.bf16.mxu0 %v3238_v4 }
 0xab5   :  { %3056 = vmatpush3.bf16.msra.mxu0 %v3499_v62 }
 0xab6   :  { %3063 = vmatprep.subr.bf16.mxu0 %v3238_v4 }
 0xb12   :  { %v1176_v43 = vpop.permute.xlu0 %1175 }
 0xb13   :  { %2820 = vmatmul.mubr.msk.f32.vlgmr.msra.gmra.mrb[10].mxu1 %vm134_vm2, %v1176_v43 }
 0xb14   :  { %3047 = vmatpush3.bf16.msra.mxu1 %v3325_v5  ;;  %2841 = vmatprep.mubr.msk.f32.mxu1 %vm3239_vm0, %v3240_v9 }
 0xb15   :  { %3048 = vmatprep.subr.bf16.mxu1 %v3238_v4 }
 0xb18   :  { %3050 = vmatpush3.bf16.msra.mxu1 %v3345_v13 }
 0xb19   :  { %3057 = vmatprep.subr.bf16.mxu1 %v3238_v4 }
 0xb1b   :  { %2842 = vmatmul.mubr.msk.f32.vlgmr.msra.gmra.mrb[12].mxu1 %vm134_vm2, %v1176_v43 }
 0xb1c   :  { %3059 = vmatpush3.bf16.msra.mxu1 %v3475_v54  ;;  %2863 = vmatprep.mubr.msk.f32.mxu1 %vm3239_vm0, %v3240_v9 }
 0xb1d   :  { %3060 = vmatprep.subr.bf16.mxu1 %v3238_v4 }
 0xb20   :  { %3062 = vmatpush3.bf16.msra.mxu1 %v3495_v61 }
 0xb21   :  { %3069 = vmatprep.subr.bf16.mxu1 %v3238_v4 }
 0xb83   :  { %v1320_v44 = vpop.f32.mrb[12].mxu0 }
 0xb84   :  { %v1321_v45 = vadd.f32 %v3521_v7, %v1320_v44  ;;  %v2832_v46 = vpop.f32.mrb[13].mxu0 }
 0xb86   :  { %1332 = vrot.lane.b32.xlu1 %v1321_v45, %s3241_s1 }
 0xbe6   :  { %v1245_v47 = vpop.f32.mrb[10].mxu1 }
 0xbe7   :  { %v1246_v48 = vadd.f32 %v3542_v14, %v1245_v47  ;;  %v2821_v50 = vpop.f32.mrb[11].mxu1 }
 0xbe9   :  { %v1324_v51 = vadd.f32 %v1321_v45, %v1246_v48 }
 0xbeb   :  { %v2541_v49 = vmul.f32 -1.442695, %v1324_v51 }
 0xbed   :  { %3166 = vpow2.f32 %v2541_v49 }
 0xbee   :  { %v1416_v52 = vpop.f32.mrb[12].mxu1 }
 0xbef   :  { %v1417_v53 = vadd.f32 %v3452_v33, %v1416_v52  ;;  %v2843_v55 = vpop.f32.mrb[13].mxu1 }
 0xbf1   :  { %1428 = vrot.lane.b32.xlu0 %v1417_v53, %s3241_s1  ;;  %v1420_v0 = vadd.f32 %v1417_v53, %v3459_v39 }
 0xbf3   :  { %v2543_v1 = vmul.f32 -1.442695, %v1420_v0 }
 0xbf7   :  { %v3167_v56 = vpop.eup %3166 }
 0xbf8   :  { %v1328_v57 = vadd.f32 1.0, %v3167_v56  ;;  %v1333_v60 = vpop.permute.xlu1 %1332 }
 0xbfa   :  { %3168 = vrcp.f32 %v1328_v57 }
 0xbfb   :  { %3170 = vpow2.f32 %v2543_v1 }
 0xc04   :  { %v3169_v59 = vpop.eup %3168 }
 0xc05   :  { %v1335_v63 = vmul.f32 %v3169_v59, %v1333_v60  ;;  %v3171_v2 = vpop.eup %3170  ;;  %v1342_v19 = vsub.f32 1.0, %v3169_v59  ;;  %v1348_v21 = vmul.f32 %v3169_v59, %v3637_v32 }
 0xc06   :  { %v1424_v3 = vadd.f32 1.0, %v3171_v2 }
 0xc07   :  { %1337 = vrot.lane.b32.xlu1 %v1335_v63, %s3241_s1 }
 0xc08   :  { %3172 = vrcp.f32 %v1424_v3 }
 0xc12   :  { %v3173_v6 = vpop.eup %3172 }
 0xc13   :  { %v1438_v24 = vsub.f32 1.0, %v3173_v6  ;;  %v1445_v26 = vmul.f32 %v3173_v6, %v1174_v40 }
 0xc63   :  { %v1429_v8 = vpop.permute.xlu0 %1428 }
 0xc64   :  { %v1431_v10 = vmul.f32 %v3173_v6, %v1429_v8 }
 0xc66   :  { %1433 = vrot.lane.b32.xlu0 %v1431_v10, %s3241_s1 }
 0xc79   :  { %v1338_v11 = vpop.permute.xlu1 %1337 }
 0xc7a   :  { %v1340_v12 = vadd.f32 %v1338_v11, %v1246_v48 }
 0xc7c   :  { %3174 = vtanh.f32 %v1340_v12 }
 0xc86   :  { %v3175_v15 = vpop.eup %3174 }
 0xc87   :  { %1344 = vrot.lane.b32.xlu1 %v3175_v15, %s3242_s6 }
 0xcd8   :  { %v1434_v16 = vpop.permute.xlu0 %1433 }
 0xcd9   :  { %v1436_v17 = vadd.f32 %v1434_v16, %v3459_v39 }
 0xcdb   :  { %3176 = vtanh.f32 %v1436_v17 }
 0xce5   :  { %v3177_v18 = vpop.eup %3176 }
 0xce6   :  { %1440 = vrot.lane.b32.xlu0 %v3177_v18, %s3242_s6 }
 0xcf9   :  { %v1345_v20 = vpop.permute.xlu1 %1344 }
 0xcfa   :  { %v1347_v22 = vmul.f32 %v1345_v20, %v1342_v19 }
 0xcfc   :  { %v3681_v23 = vadd.f32 %v1348_v21, %v1347_v22 }
 0xcfe   :  { %1523 = vrot.lane.b32.xlu1 %v3681_v23, %s3242_s6 }
 0xd58   :  { %v1441_v25 = vpop.permute.xlu0 %1440 }
 0xd59   :  { %v1443_v27 = vmul.f32 %v1441_v25, %v1438_v24 }
 0xd5b   :  { %v3687_v28 = vadd.f32 %v1445_v26, %v1443_v27 }
 0xd5d   :  { %1448 = vrot.lane.b32.xlu0 %v3687_v28, %s3242_s6  ;;  %v1719_v12 = vrot.slane %v3687_v28, 6 }
 0xd70   :  { %v1524_v29 = vpop.permute.xlu1 %1523 }
 0xd71   :  { %2864 = vmatmul.mubr.msk.f32.vlgmr.msra.gmra.mrb[14].mxu1 %vm134_vm2, %v1524_v29 }
 0xd72   :  { %3071 = vmatpush3.bf16.msra.mxu1 %v3486_v58  ;;  %2885 = vmatprep.mubr.msk.f32.mxu1 %vm3239_vm0, %v3240_v9 }
 0xd73   :  { %3072 = vmatprep.subr.bf16.mxu1 %v3238_v4 }
 0xd76   :  { %3074 = vmatpush3.bf16.msra.mxu1 %v3499_v62 }
 0xd77   :  { %3081 = vmatprep.subr.bf16.mxu1 %v3238_v4 }
 0xdcf   :  { %v1449_v30 = vpop.permute.xlu0 %1448 }
 0xdd0   :  { %2853 = vmatmul.mubr.msk.f32.vlgmr.msra.gmra.mrb[14].mxu0 %vm134_vm2, %v1449_v30 }
 0xdd1   :  { %3065 = vmatpush3.bf16.msra.mxu0 %v3325_v5  ;;  %2874 = vmatprep.mubr.msk.f32.mxu0 %vm3239_vm0, %v3240_v9 }
 0xdd2   :  { %3066 = vmatprep.subr.bf16.mxu0 %v3238_v4 }
 0xdd5   :  { %3068 = vmatpush3.bf16.msra.mxu0 %v3345_v13 }
 0xdd6   :  { %3075 = vmatprep.subr.bf16.mxu0 %v3238_v4 }
 0xdd8   :  { %2875 = vmatmul.mubr.msk.f32.vlgmr.msra.gmra.mrb[16].mxu0 %vm134_vm2, %v1449_v30 }
 0xdd9   :  { %3077 = vmatpush3.bf16.msra.mxu0 %v3475_v54  ;;  %2896 = vmatprep.mubr.msk.f32.mxu0 %vm3239_vm0, %v3240_v9 }
 0xdda   :  { %3078 = vmatprep.subr.bf16.mxu0 %v3238_v4 }
 0xddd   :  { %3080 = vmatpush3.bf16.msra.mxu0 %v3495_v61 }
 0xdde   :  { %3087 = vmatprep.subr.bf16.mxu0 %v3238_v4 }
 0xe44   :  { %v1593_v31 = vpop.f32.mrb[14].mxu1 }
 0xe45   :  { %v1594_v32 = vadd.f32 %v3521_v7, %v1593_v31  ;;  %v2865_v34 = vpop.f32.mrb[15].mxu1 }
 0xe47   :  { %1605 = vrot.lane.b32.xlu0 %v1594_v32, %s3241_s1 }
 0xea3   :  { %v1518_v35 = vpop.f32.mrb[14].mxu0 }
 0xea4   :  { %v1519_v36 = vadd.f32 %v3542_v14, %v1518_v35  ;;  %v2854_v37 = vpop.f32.mrb[15].mxu0 }
 0xea6   :  { %v1597_v41 = vadd.f32 %v1594_v32, %v1519_v36 }
 0xea8   :  { %v2546_v38 = vmul.f32 -1.442695, %v1597_v41 }
 0xeaa   :  { %3178 = vpow2.f32 %v2546_v38 }
 0xeab   :  { %v1689_v40 = vpop.f32.mrb[16].mxu0 }
 0xeac   :  { %v1690_v42 = vadd.f32 %v3452_v33, %v1689_v40  ;;  %v2876_v43 = vpop.f32.mrb[17].mxu0 }
 0xeae   :  { %v1694_v44 = vrot.slane %v1690_v42, 6 }
 0xeb0   :  { %1703 = vrot.lane.b32.xlu1 %v1694_v44, %s3241_s1  ;;  %v1696_v51 = vadd.f32 %v1694_v44, %v3459_v39 }
 0xeb2   :  { %v2548_v49 = vmul.f32 -1.442695, %v1696_v51 }
 0xeb4   :  { %v3179_v45 = vpop.eup %3178 }
 0xeb5   :  { %v1601_v46 = vadd.f32 1.0, %v3179_v45 }
 0xeb7   :  { %3180 = vrcp.f32 %v1601_v46 }
 0xeb8   :  { %3182 = vpow2.f32 %v2548_v49 }
 0xeb9   :  { %v1606_v48 = vpop.permute.xlu0 %1605 }
 0xec1   :  { %v3181_v47 = vpop.eup %3180 }
 0xec2   :  { %v1608_v50 = vmul.f32 %v3181_v47, %v1606_v48  ;;  %v3183_v52 = vpop.eup %3182  ;;  %v1615_v3 = vsub.f32 1.0, %v3181_v47  ;;  %v1621_v8 = vmul.f32 %v3181_v47, %v3681_v23 }
 0xec3   :  { %v1700_v53 = vadd.f32 1.0, %v3183_v52 }
 0xec4   :  { %1610 = vrot.lane.b32.xlu0 %v1608_v50, %s3241_s1 }
 0xec5   :  { %3184 = vrcp.f32 %v1700_v53 }
 0xecf   :  { %v3185_v55 = vpop.eup %3184 }
 0xed0   :  { %v1713_v15 = vsub.f32 1.0, %v3185_v55  ;;  %v1721_v18 = vmul.f32 %v3185_v55, %v1719_v12 }
 0xf22   :  { %v1704_v56 = vpop.permute.xlu1 %1703 }
 0xf23   :  { %v1706_v57 = vmul.f32 %v3185_v55, %v1704_v56 }
 0xf25   :  { %1708 = vrot.lane.b32.xlu1 %v1706_v57, %s3241_s1 }
 0xf36   :  { %v1611_v59 = vpop.permute.xlu0 %1610 }
 0xf37   :  { %v1613_v60 = vadd.f32 %v1611_v59, %v1519_v36 }
 0xf39   :  { %3186 = vtanh.f32 %v1613_v60 }
 0xf43   :  { %v3187_v63 = vpop.eup %3186 }
 0xf44   :  { %1617 = vrot.lane.b32.xlu0 %v3187_v63, %s3242_s6 }
 0xf97   :  { %v1709_v0 = vpop.permute.xlu1 %1708 }
 0xf98   :  { %v1711_v1 = vadd.f32 %v1709_v0, %v3459_v39 }
 0xf9a   :  { %3188 = vtanh.f32 %v1711_v1 }
 0xfa4   :  { %v3189_v2 = vpop.eup %3188 }
 0xfa5   :  { %1715 = vrot.lane.b32.xlu1 %v3189_v2, %s3242_s6 }
 0xfb6   :  { %v1618_v6 = vpop.permute.xlu0 %1617 }
 0xfb7   :  { %v1620_v10 = vmul.f32 %v1618_v6, %v1615_v3 }
 0xfb9   :  { %v3724_v11 = vadd.f32 %v1621_v8, %v1620_v10 }
 0xfbb   :  { %1800 = vrot.lane.b32.xlu0 %v3724_v11, %s3242_s6 }
0x1017   :  { %v1716_v16 = vpop.permute.xlu1 %1715 }
0x1018   :  { %v1718_v17 = vmul.f32 %v1716_v16, %v1713_v15 }
0x101a   :  { %v3729_v19 = vadd.f32 %v1721_v18, %v1718_v17 }
0x101c   :  { %v1724_v20 = vrot.slane %v3729_v19, 2  ;;  %v1996_v63 = vrot.slane %v3729_v19, 6 }
0x101e   :  { %1725 = vrot.lane.b32.xlu1 %v1724_v20, %s3242_s6 }
0x102d   :  { %v1801_v21 = vpop.permute.xlu0 %1800 }
0x102e   :  { %2897 = vmatmul.mubr.msk.f32.vlgmr.msra.gmra.mrb[18].mxu0 %vm134_vm2, %v1801_v21 }
0x102f   :  { %3089 = vmatpush3.bf16.msra.mxu0 %v3486_v58  ;;  %2918 = vmatprep.mubr.msk.f32.mxu0 %vm3239_vm0, %v3240_v9 }
0x1030   :  { %3090 = vmatprep.subr.bf16.mxu0 %v3238_v4 }
0x1033   :  { %3092 = vmatpush3.bf16.msra.mxu0 %v3499_v62 }
0x1034   :  { %3099 = vmatprep.subr.bf16.mxu0 %v3238_v4 }
0x1090   :  { %v1726_v22 = vpop.permute.xlu1 %1725 }
0x1091   :  { %2886 = vmatmul.mubr.msk.f32.vlgmr.msra.gmra.mrb[16].mxu1 %vm134_vm2, %v1726_v22 }
0x1092   :  { %3083 = vmatpush3.bf16.msra.mxu1 %v3325_v5  ;;  %2907 = vmatprep.mubr.msk.f32.mxu1 %vm3239_vm0, %v3240_v9 }
0x1093   :  { %3084 = vmatprep.subr.bf16.mxu1 %v3238_v4 }
0x1096   :  { %3086 = vmatpush3.bf16.msra.mxu1 %v3345_v13 }
0x1097   :  { %3093 = vmatprep.subr.bf16.mxu1 %v3238_v4 }
0x1099   :  { %2908 = vmatmul.mubr.msk.f32.vlgmr.msra.gmra.mrb[18].mxu1 %vm134_vm2, %v1726_v22 }
0x109a   :  { %3095 = vmatpush3.bf16.msra.mxu1 %v3475_v54  ;;  %2929 = vmatprep.mubr.msk.f32.mxu1 %vm3239_vm0, %v3240_v9 }
0x109b   :  { %3096 = vmatprep.subr.bf16.mxu1 %v3238_v4 }
0x109e   :  { %3098 = vmatpush3.bf16.msra.mxu1 %v3495_v61 }
0x109f   :  { %3105 = vmatprep.subr.bf16.mxu1 %v3238_v4 }
0x1101   :  { %v1870_v23 = vpop.f32.mrb[18].mxu0 }
0x1102   :  { %v1871_v24 = vadd.f32 %v3521_v7, %v1870_v23  ;;  %v2898_v25 = vpop.f32.mrb[19].mxu0 }
0x1104   :  { %1882 = vrot.lane.b32.xlu0 %v1871_v24, %s3241_s1 }
0x1164   :  { %v1795_v26 = vpop.f32.mrb[16].mxu1 }
0x1165   :  { %v1796_v27 = vadd.f32 %v3542_v14, %v1795_v26  ;;  %v2887_v28 = vpop.f32.mrb[17].mxu1 }
0x1167   :  { %v1874_v29 = vadd.f32 %v1871_v24, %v1796_v27 }
0x1169   :  { %v2551_v30 = vmul.f32 -1.442695, %v1874_v29 }
0x116b   :  { %3190 = vpow2.f32 %v2551_v30 }
0x116c   :  { %v1966_v31 = vpop.f32.mrb[18].mxu1 }
0x116d   :  { %v1967_v32 = vadd.f32 %v3452_v33, %v1966_v31  ;;  %v2909_v34 = vpop.f32.mrb[19].mxu1 }
0x116f   :  { %v1971_v35 = vrot.slane %v1967_v32, 4 }
0x1171   :  { %1980 = vrot.lane.b32.xlu1 %v1971_v35, %s3241_s1  ;;  %v1973_v42 = vadd.f32 %v1971_v35, %v3459_v39 }
0x1173   :  { %v2553_v43 = vmul.f32 -1.442695, %v1973_v42 }
0x1175   :  { %v3191_v36 = vpop.eup %3190 }
0x1176   :  { %v1878_v37 = vadd.f32 1.0, %v3191_v36  ;;  %v1883_v38 = vpop.permute.xlu0 %1882 }
0x1178   :  { %3192 = vrcp.f32 %v1878_v37 }
0x1179   :  { %3194 = vpow2.f32 %v2553_v43 }
0x1182   :  { %v3193_v41 = vpop.eup %3192 }
0x1183   :  { %v1885_v40 = vmul.f32 %v3193_v41, %v1883_v38  ;;  %v3195_v44 = vpop.eup %3194  ;;  %v1892_v55 = vsub.f32 1.0, %v3193_v41  ;;  %v1898_v57 = vmul.f32 %v3193_v41, %v3724_v11 }
0x1184   :  { %v1977_v45 = vadd.f32 1.0, %v3195_v44 }
0x1185   :  { %1887 = vrot.lane.b32.xlu0 %v1885_v40, %s3241_s1 }
0x1186   :  { %3196 = vrcp.f32 %v1977_v45 }
0x1190   :  { %v3197_v33 = vpop.eup %3196 }
0x1191   :  { %v1990_v0 = vsub.f32 1.0, %v3197_v33  ;;  %v1998_v2 = vmul.f32 %v3197_v33, %v1996_v63 }
0x11e3   :  { %v1981_v46 = vpop.permute.xlu1 %1980 }
0x11e4   :  { %v1983_v47 = vmul.f32 %v3197_v33, %v1981_v46 }
0x11e6   :  { %1985 = vrot.lane.b32.xlu1 %v1983_v47, %s3241_s1 }
0x11f7   :  { %v1888_v48 = vpop.permute.xlu0 %1887 }
0x11f8   :  { %v1890_v50 = vadd.f32 %v1888_v48, %v1796_v27 }
0x11fa   :  { %3198 = vtanh.f32 %v1890_v50 }
0x1204   :  { %v3199_v51 = vpop.eup %3198 }
0x1205   :  { %1894 = vrot.lane.b32.xlu0 %v3199_v51, %s3242_s6  ;;  %v3221_v51 = vld [vmem:[%s3838_s9] ss:$0 sm:$0xff] }
0x1258   :  { %v1986_v49 = vpop.permute.xlu1 %1985 }
0x1259   :  { %v1988_v52 = vadd.f32 %v1986_v49, %v3459_v39 }
0x125b   :  { %3200 = vtanh.f32 %v1988_v52 }
0x1265   :  { %v3201_v53 = vpop.eup %3200 }
0x1266   :  { %1992 = vrot.lane.b32.xlu1 %v3201_v53, %s3242_s6 }
0x1277   :  { %v1895_v56 = vpop.permute.xlu0 %1894 }
0x1278   :  { %v1897_v59 = vmul.f32 %v1895_v56, %v1892_v55  ;;  %v3222_v55 = vld [vmem:[%s3837_s8] ss:$0 sm:$0xff] }
0x127a   :  { %v3766_v60 = vadd.f32 %v1898_v57, %v1897_v59 }
0x127c   :  { %2077 = vrot.lane.b32.xlu0 %v3766_v60, %s3242_s6 }
0x12d8   :  { %v1993_v1 = vpop.permute.xlu1 %1992 }
0x12d9   :  { %v1995_v3 = vmul.f32 %v1993_v1, %v1990_v0 }
0x12db   :  { %v3771_v6 = vadd.f32 %v1998_v2, %v1995_v3 }
0x12dd   :  { %v2001_v8 = vrot.slane %v3771_v6, 4  ;;  %v2273_v42 = vrot.slane %v3771_v6, 6  ;;  %v2562_v6 = vld [vmem:[%s3839_s10] ss:$0 sm:$0xff] }
0x12df   :  { %2002 = vrot.lane.b32.xlu1 %v2001_v8, %s3242_s6 }
0x12ee   :  { %v2078_v10 = vpop.permute.xlu0 %2077 }
0x12ef   :  { %2930 = vmatmul.mubr.msk.f32.vlgmr.msra.gmra.mrb[20].mxu1 %vm134_vm2, %v2078_v10 }
0x12f0   :  { %3107 = vmatpush3.bf16.msra.mxu1 %v3486_v58  ;;  %2951 = vmatprep.mubr.msk.f32.mxu1 %vm3239_vm0, %v3240_v9 }
0x12f1   :  { %3108 = vmatprep.subr.bf16.mxu1 %v3238_v4 }
0x12f4   :  { %3110 = vmatpush3.bf16.msra.mxu1 %v3499_v62 }
0x1351   :  { %v2003_v11 = vpop.permute.xlu1 %2002 }
0x1352   :  { %2919 = vmatmul.mubr.msk.f32.vlgmr.msra.gmra.mrb[20].mxu0 %vm134_vm2, %v2003_v11 }
0x1353   :  { %3101 = vmatpush3.bf16.msra.mxu0 %v3325_v5  ;;  %2940 = vmatprep.mubr.msk.f32.mxu0 %vm3239_vm0, %v3240_v9 }
0x1354   :  { %3102 = vmatprep.subr.bf16.mxu0 %v3238_v4 }
0x1357   :  { %3104 = vmatpush3.bf16.msra.mxu0 %v3345_v13 }
0x1358   :  { %3111 = vmatprep.subr.bf16.mxu0 %v3238_v4 }
0x135a   :  { %2941 = vmatmul.mubr.msk.f32.vlgmr.msra.gmra.mrb[22].mxu0 %vm134_vm2, %v2003_v11 }
0x135b   :  { %3113 = vmatpush3.bf16.msra.mxu0 %v3475_v54  ;;  %2962 = vmatprep.mubr.msk.f32.mxu0 %vm3239_vm0, %v3240_v9 }
0x135c   :  { %3114 = vmatprep.subr.bf16.mxu0 %v3238_v4  ;;  %v3220_v4 = vld [vmem:[%s3834_s5] ss:$0 sm:$0xff] }
0x135f   :  { %3116 = vmatpush3.bf16.msra.mxu0 %v3495_v61 }
0x13c2   :  { %v2147_v5 = vpop.f32.mrb[20].mxu1 }
0x13c3   :  { %v2148_v58 = vadd.f32 %v3521_v7, %v2147_v5  ;;  %v2931_v62 = vpop.f32.mrb[21].mxu1 }
0x13c5   :  { %2159 = vrot.lane.b32.xlu0 %v2148_v58, %s3241_s1 }
0x1425   :  { %v2072_v13 = vpop.f32.mrb[20].mxu0 }
0x1426   :  { %v2073_v12 = vadd.f32 %v3542_v14, %v2072_v13  ;;  %v2920_v15 = vpop.f32.mrb[21].mxu0 }
0x1428   :  { %v2151_v16 = vadd.f32 %v2148_v58, %v2073_v12 }
0x142a   :  { %v2556_v17 = vmul.f32 -1.442695, %v2151_v16 }
0x142c   :  { %3202 = vpow2.f32 %v2556_v17 }
0x142d   :  { %v2243_v54 = vpop.f32.mrb[22].mxu0 }
0x142e   :  { %v2244_v9 = vadd.f32 %v3220_v4, %v2243_v54  ;;  %v2942_v61 = vpop.f32.mrb[23].mxu0  ;;  %v2563_v4 = vld [vmem:[#allocation3] ss:$0 sm:$0xff] }
0x1430   :  { %v2248_v18 = vrot.slane %v2244_v9, 2 }
0x1432   :  { %2257 = vrot.lane.b32.xlu1 %v2248_v18, %s3241_s1  ;;  %v2250_v22 = vadd.f32 %v2248_v18, %v3459_v39 }
0x1434   :  { %v2558_v23 = vmul.f32 -1.442695, %v2250_v22 }
0x1436   :  { %v3203_v7 = vpop.eup %3202 }
0x1437   :  { %v2155_v19 = vadd.f32 1.0, %v3203_v7  ;;  %v2160_v21 = vpop.permute.xlu0 %2159 }
0x1439   :  { %3204 = vrcp.f32 %v2155_v19 }
0x143a   :  { %3206 = vpow2.f32 %v2558_v23 }
0x1443   :  { %v3205_v20 = vpop.eup %3204 }
0x1444   :  { %v2162_v14 = vmul.f32 %v3205_v20, %v2160_v21  ;;  %v3207_v24 = vpop.eup %3206  ;;  %v2169_v36 = vsub.f32 1.0, %v3205_v20  ;;  %v2175_v41 = vmul.f32 %v3205_v20, %v3766_v60 }
0x1445   :  { %v2254_v25 = vadd.f32 1.0, %v3207_v24 }
0x1446   :  { %2164 = vrot.lane.b32.xlu0 %v2162_v14, %s3241_s1 }
0x1447   :  { %3208 = vrcp.f32 %v2254_v25 }
0x1451   :  { %v3209_v26 = vpop.eup %3208 }
0x1452   :  { %v2267_v43 = vsub.f32 1.0, %v3209_v26  ;;  %v2275_v45 = vmul.f32 %v3209_v26, %v2273_v42 }
0x14a4   :  { %v2258_v27 = vpop.permute.xlu1 %2257 }
0x14a5   :  { %v2260_v28 = vmul.f32 %v3209_v26, %v2258_v27 }
0x14a7   :  { %2262 = vrot.lane.b32.xlu1 %v2260_v28, %s3241_s1 }
0x14b8   :  { %v2165_v29 = vpop.permute.xlu0 %2164 }
0x14b9   :  { %v2167_v30 = vadd.f32 %v2165_v29, %v2073_v12 }
0x14bb   :  { %3210 = vtanh.f32 %v2167_v30 }
0x14c5   :  { %v3211_v31 = vpop.eup %3210 }
0x14c6   :  { %2171 = vrot.lane.b32.xlu0 %v3211_v31, %s3242_s6 }
0x1519   :  { %v2263_v32 = vpop.permute.xlu1 %2262 }
0x151a   :  { %v2265_v34 = vadd.f32 %v2263_v32, %v3459_v39 }
0x151c   :  { %3212 = vtanh.f32 %v2265_v34 }
0x1526   :  { %v3213_v35 = vpop.eup %3212 }
0x1527   :  { %2269 = vrot.lane.b32.xlu1 %v3213_v35, %s3242_s6 }
0x1538   :  { %v2172_v37 = vpop.permute.xlu0 %2171 }
0x1539   :  { %v2174_v38 = vmul.f32 %v2172_v37, %v2169_v36 }
0x153b   :  { %v2176_v40 = vadd.f32 %v2175_v41, %v2174_v38 }
0x153d   :  { %2354 = vrot.lane.b32.xlu0 %v2176_v40, %s3242_s6 }
0x1599   :  { %v2270_v44 = vpop.permute.xlu1 %2269 }
0x159a   :  { %v2272_v33 = vmul.f32 %v2270_v44, %v2267_v43 }
0x159c   :  { %v2276_v46 = vadd.f32 %v2275_v45, %v2272_v33 }
0x159e   :  { %v2278_v39 = vrot.slane %v2276_v46, 6 }
0x15a0   :  { %2279 = vrot.lane.b32.xlu1 %v2278_v39, %s3242_s6 }
0x15af   :  { %v2355_v47 = vpop.permute.xlu0 %2354 }
0x15b0   :  { %2963 = vmatmul.mubr.msk.f32.vlgmr.msra.gmra.mrb[24].mxu0 %vm134_vm2, %v2355_v47 }
0x1612   :  { %v2280_v48 = vpop.permute.xlu1 %2279 }
0x1613   :  { %2952 = vmatmul.mubr.msk.f32.vlgmr.msra.gmra.mrb[22].mxu1 %vm134_vm2, %v2280_v48 }
0x1683   :  { %v2424_v50 = vpop.f32.mrb[24].mxu0 }
0x1684   :  { %v2425_v49 = vadd.f32 %v3221_v51, %v2424_v50  ;;  %v2964_v52 = vpop.f32.mrb[25].mxu0 }
0x1686   :  { %2436 = vrot.lane.b32.xlu0 %v2425_v49, %s3241_s1 }
0x16e6   :  { %v2349_v53 = vpop.f32.mrb[22].mxu1 }
0x16e7   :  { %v2350_v56 = vadd.f32 %v3222_v55, %v2349_v53  ;;  %v2953_v57 = vpop.f32.mrb[23].mxu1 }
0x16e9   :  { %v2428_v59 = vadd.f32 %v2425_v49, %v2350_v56 }
0x16eb   :  { %v2561_v60 = vmul.f32 -1.442695, %v2428_v59 }
0x16ed   :  { %3214 = vpow2.f32 %v2561_v60 }
0x16f7   :  { %v3215_v63 = vpop.eup %3214 }
0x16f8   :  { %v2432_v0 = vadd.f32 1.0, %v3215_v63  ;;  %v2437_v2 = vpop.permute.xlu0 %2436 }
0x16fa   :  { %3216 = vrcp.f32 %v2432_v0 }
0x1704   :  { %v3217_v1 = vpop.eup %3216 }
0x1705   :  { %v2439_v3 = vmul.f32 %v3217_v1, %v2437_v2  ;;  %v2446_v5 = vsub.f32 1.0, %v3217_v1  ;;  %v2452_v13 = vmul.f32 %v3217_v1, %v2176_v40 }
0x1707   :  { %2441 = vrot.lane.b32.xlu1 %v2439_v3, %s3241_s1 }
0x170b   :  { %2460 = vrot.lane.b32.xlu1 %v2562_v6, %s3243_s17 }
0x1779   :  { %v2442_v8 = vpop.permute.xlu1 %2441 }
0x177a   :  { %v2444_v10 = vadd.f32 %v2442_v8, %v2350_v56 }
0x177c   :  { %3218 = vtanh.f32 %v2444_v10 }
0x177d   :  { %v2461_v12 = vpop.permute.xlu1 %2460 }
0x1786   :  { %v3219_v11 = vpop.eup %3218 }
0x1787   :  { %2448 = vrot.lane.b32.xlu0 %v3219_v11, %s3242_s6 }
0x17f9   :  { %v2449_v58 = vpop.permute.xlu0 %2448 }
0x17fa   :  { %v2451_v62 = vmul.f32 %v2449_v58, %v2446_v5 }
0x17fc   :  { %v2453_v15 = vadd.f32 %v2452_v13, %v2451_v62 }
0x17fe   :  { %v2463_v16 = vmul.f32 %v2461_v12, %v2453_v15 }
0x1800   :  { %2465 = vrot.lane.b32.xlu0 %v2463_v16, %s3242_s6 }
0x1872   :  { %v2466_v17 = vpop.permute.xlu0 %2465 }
0x1873   :  { %v2469_v54 = vsel %vm2468_vm3, %v2466_v17, 0.0 }
0x1874   :  { %2470 = vadd.xlane.f32.xlu1 %v2469_v54 }
0x1901   :  { %v2471_v9 = vpop.xlane.xlu1 %2470 }
0x1902   :  { %v2479_v61 = vadd.f32 %v2563_v4, %v2471_v9 }
0x1904   :  { %2481 = vst.msk [vmem:[%s3841_s12] sm:$0x3] %vm2480_vm4, %v2479_v61 }
0x1905   :  { %2486 = vsyncpa [#allocation5], 1 }

</bundles_post_ra>
